<compile_context>
chip_gen: v6e
topology: v6e:2x2x1
jax: 0.10.0
libtpu: 0.0.40
codegen_flags: <defaults>
</compile_context>

<pallas_src>
import functools

import numpy as np
import jax
import jax.numpy as jnp
from jax import lax
from jax.experimental import pallas as pl
from jax.experimental.pallas import tpu as pltpu


def _round_up(n, m):
    return ((n + m - 1) // m) * m


def _slab_layout(input_size, hidden_size, output_size):
    """Row offsets of each parameter inside the packed weight slab."""
    I, H, O = input_size, hidden_size, output_size
    G = 4 * H
    r_wih = 0                          # (I, 4H)  W_ih^T
    r_whh = _round_up(r_wih + I, 8)    # (H, 4H)  W_hh^T
    r_b = _round_up(r_whh + H, 8)      # (1, 4H)  b_ih + b_hh
    r_wfc = _round_up(r_b + 1, 8)      # (H, O)   W_fc^T
    r_bfc = _round_up(r_wfc + H, 8)    # (1, O)   b_fc
    rows = _round_up(r_bfc + 1, 8)
    cols = _round_up(max(G, O), 128)
    return (r_wih, r_whh, r_b, r_wfc, r_bfc), (rows, cols)


def pack_params(w_ih, w_hh, b_ih, b_hh, w_fc, b_fc):
    """One-time, host-side prepack of all weights into a single lane-dense,
    (8,128)-aligned f32 slab.  Call once at model-load time; the jitted
    forward never touches raw PyTorch-layout weights again."""
    H4, I = w_ih.shape
    H = H4 // 4
    O = w_fc.shape[0]
    (r_wih, r_whh, r_b, r_wfc, r_bfc), (rows, cols) = _slab_layout(I, H, O)
    slab = np.zeros((rows, cols), np.float32)
    slab[r_wih:r_wih + I, :H4] = np.asarray(w_ih, np.float32).T        # W_ih^T
    slab[r_whh:r_whh + H, :H4] = np.asarray(w_hh, np.float32).T        # W_hh^T
    slab[r_b, :H4] = np.asarray(b_ih, np.float32) + np.asarray(b_hh, np.float32)
    slab[r_wfc:r_wfc + H, :O] = np.asarray(w_fc, np.float32).T         # W_fc^T
    slab[r_bfc, :O] = np.asarray(b_fc, np.float32)
    return jnp.asarray(slab)


def _lstm_recognizer_kernel(x_ref, w_ref, out_ref, *, input_size, hidden_size,
                            output_size):
    # x_ref:   (B, T, I)    batch-first input (PyTorch layout, no wrapper
    #                       transpose / extra HBM round trip)
    # w_ref:   (rows, 128)  packed weight slab (see pack_params)
    # out_ref: (B, O)       softmax(fc(h_T))
    B, T, I = x_ref.shape
    H = hidden_size
    O = output_size
    G = 4 * H
    (r_wih, r_whh, r_b, r_wfc, r_bfc), _ = _slab_layout(I, H, O)
    hi = lax.Precision.HIGHEST

    # Static slices of the single resident weight slab (no extra DMAs).
    wih = w_ref[r_wih:r_wih + I, 0:G]            # (I, 4H)
    whh = w_ref[r_whh:r_whh + H, 0:G]            # (H, 4H)
    b = w_ref[r_b:r_b + 1, 0:G]                  # (1, 4H) = b_ih + b_hh
    wfc = w_ref[r_wfc:r_wfc + H, 0:O]            # (H, O)
    bfc = w_ref[r_bfc:r_bfc + 1, 0:O]            # (1, O)

    # --- Hoisted input projection, time-major, bias folded in once. ---------
    # (B, T, I) -> (T, B, I) -> (T*B, I): one up-front relayout so every
    # per-step read below is a contiguous static sublane slice.
    xt = jnp.transpose(x_ref[...], (1, 0, 2)).reshape(T * B, I)
    xg = jnp.dot(xt, wih, preferred_element_type=jnp.float32,
                 precision=hi) + b                                 # (T*B, 4H)

    # Lane mask selecting the g-gate (tanh) lanes [2H, 3H).
    lane = lax.broadcasted_iota(jnp.int32, (B, G), 1)
    g_mask = (lane >= 2 * H) & (lane < 3 * H)

    h = jnp.zeros((B, H), jnp.float32)
    c = jnp.zeros((B, H), jnp.float32)

    # --- Fully unrolled recurrence (T static, small). ------------------------
    # Only jnp.dot(h, whh) + one add sits on the serial dependency chain.
    for t in range(T):
        gates = (jnp.dot(h, whh, preferred_element_type=jnp.float32,
                         precision=hi)
                 + xg[t * B:(t + 1) * B, :])                       # (B, 4H)
        sig_all = jax.nn.sigmoid(gates)            # 1 EUP pass, full vreg
        tanh_all = jnp.tanh(gates)                 # 1 EUP pass, full vreg
        act = jnp.where(g_mask, tanh_all, sig_all)  # 1 VPU select
        i_g = act[:, 0:H]
        f_g = act[:, H:2 * H]
        g_g = act[:, 2 * H:3 * H]
        o_g = act[:, 3 * H:4 * H]
        c = f_g * c + i_g * g_g
        h = o_g * jnp.tanh(c)

    # --- Final linear + softmax over the last hidden state. ------------------
    logits = jnp.dot(h, wfc, preferred_element_type=jnp.float32,
                     precision=hi) + bfc                           # (B, O)
    m = jnp.max(logits, axis=-1, keepdims=True)
    e = jnp.exp(logits - m)
    inv = pl.reciprocal(jnp.sum(e, axis=-1, keepdims=True), approx=False)
    out_ref[...] = e * inv


@functools.partial(
    jax.jit, static_argnames=("input_size", "hidden_size", "output_size"))
def lstm_recognizer_forward(x, packed_weights, *, input_size=7, hidden_size=16,
                            output_size=7):
    """x: (B, T, input_size) float32, batch-first like PyTorch.
    packed_weights: output of pack_params (prepacked once at model load)."""
    B = x.shape[0]
    kernel = functools.partial(_lstm_recognizer_kernel,
                               input_size=input_size,
                               hidden_size=hidden_size,
                               output_size=output_size)
    vmem = pl.BlockSpec(memory_space=pltpu.MemorySpace.VMEM)
    return pl.pallas_call(
        kernel,
        out_shape=jax.ShapeDtypeStruct((B, output_size), jnp.float32),
        in_specs=[vmem, vmem],
        out_specs=vmem,
    )(x.astype(jnp.float32), packed_weights)


def _init_params(key, input_size, hidden_size, output_size):
    """Deterministic init mimicking PyTorch's uniform(-1/sqrt(H), 1/sqrt(H))."""
    ks = jax.random.split(key, 6)
    k = 1.0 / jnp.sqrt(hidden_size)
    w_ih = jax.random.uniform(ks[0], (4 * hidden_size, input_size),
                              minval=-k, maxval=k, dtype=jnp.float32)
    w_hh = jax.random.uniform(ks[1], (4 * hidden_size, hidden_size),
                              minval=-k, maxval=k, dtype=jnp.float32)
    b_ih = jax.random.uniform(ks[2], (4 * hidden_size,),
                              minval=-k, maxval=k, dtype=jnp.float32)
    b_hh = jax.random.uniform(ks[3], (4 * hidden_size,),
                              minval=-k, maxval=k, dtype=jnp.float32)
    w_fc = jax.random.uniform(ks[4], (output_size, hidden_size),
                              minval=-k, maxval=k, dtype=jnp.float32)
    b_fc = jax.random.uniform(ks[5], (output_size,),
                              minval=-k, maxval=k, dtype=jnp.float32)
    return w_ih, w_hh, b_ih, b_hh, w_fc, b_fc


def _reference_forward(x, w_ih, w_hh, b_ih, b_hh, w_fc, b_fc):
    """Pure-JAX reference of the PyTorch forward (sanity check)."""
    hi = lax.Precision.HIGHEST
    B, T, I = x.shape
    H = w_hh.shape[1]
    h = jnp.zeros((B, H), jnp.float32)
    c = jnp.zeros((B, H), jnp.float32)
    for t in range(T):
        gates = (jnp.dot(x[:, t, :], w_ih.T, precision=hi) + b_ih
                 + jnp.dot(h, w_hh.T, precision=hi) + b_hh)
        i_g = jax.nn.sigmoid(gates[:, 0:H])
        f_g = jax.nn.sigmoid(gates[:, H:2 * H])
        g_g = jnp.tanh(gates[:, 2 * H:3 * H])
        o_g = jax.nn.sigmoid(gates[:, 3 * H:4 * H])
        c = f_g * c + i_g * g_g
        h = o_g * jnp.tanh(c)
    logits = jnp.dot(h, w_fc.T, precision=hi) + b_fc
    return jax.nn.softmax(logits, axis=-1)


if __name__ == "__main__":
    input_size, hidden_size, output_size = 7, 16, 7
    batch, seq = 2, 8

    key = jax.random.PRNGKey(0)
    k_x, k_p = jax.random.split(key)
    x = jax.random.normal(k_x, (batch, seq, input_size), dtype=jnp.float32)
    params = _init_params(k_p, input_size, hidden_size, output_size)

    # One-time, model-load-time prepack (outside the jitted forward).
    packed = pack_params(*params)

    out = lstm_recognizer_forward(x, packed, input_size=input_size,
                                  hidden_size=hidden_size,
                                  output_size=output_size)
    out = jax.block_until_ready(out)

    ref = _reference_forward(x, *params)
    assert out.shape == (batch, output_size)
    assert jnp.allclose(out, ref, atol=1e-5, rtol=1e-5), "mismatch vs reference"
    assert jnp.allclose(jnp.sum(out, axis=-1), 1.0, atol=1e-5)

    print("KERNEL_OK")
</pallas_src>

<mosaic_0001>
module attributes {stable_mosaic.version = 11 : i64} {
  func.func @_lstm_recognizer_kernel(%arg0: memref<2x8x7xf32, #tpu.memory_space<vmem>>, %arg1: memref<56x128xf32, #tpu.memory_space<vmem>>, %arg2: memref<2x7xf32, #tpu.memory_space<vmem>>) attributes {dimension_semantics = [], scalar_prefetch = 0 : i64, scratch_operands = 0 : i64, tpu.core_type = #tpu.core_type<tc>} {
    %c0 = arith.constant 0 : index
    %c0_0 = arith.constant 0 : index
    %0 = vector.load %arg1[%c0, %c0_0] : memref<56x128xf32, #tpu.memory_space<vmem>>, vector<7x64xf32>
    %c8 = arith.constant 8 : index
    %c0_1 = arith.constant 0 : index
    %1 = vector.load %arg1[%c8, %c0_1] : memref<56x128xf32, #tpu.memory_space<vmem>>, vector<16x64xf32>
    %c24 = arith.constant 24 : index
    %c0_2 = arith.constant 0 : index
    %2 = vector.load %arg1[%c24, %c0_2] : memref<56x128xf32, #tpu.memory_space<vmem>>, vector<1x64xf32>
    %c32 = arith.constant 32 : index
    %c0_3 = arith.constant 0 : index
    %3 = vector.load %arg1[%c32, %c0_3] : memref<56x128xf32, #tpu.memory_space<vmem>>, vector<16x7xf32>
    %c48 = arith.constant 48 : index
    %c0_4 = arith.constant 0 : index
    %4 = vector.load %arg1[%c48, %c0_4] : memref<56x128xf32, #tpu.memory_space<vmem>>, vector<1x7xf32>
    %c0_5 = arith.constant 0 : index
    %c0_6 = arith.constant 0 : index
    %c0_7 = arith.constant 0 : index
    %5 = vector.load %arg0[%c0_5, %c0_6, %c0_7] : memref<2x8x7xf32, #tpu.memory_space<vmem>>, vector<2x8x7xf32>
    %6 = tpu.transpose %5, [1, 0, 2] : vector<2x8x7xf32> -> vector<8x2x7xf32>
    %7 = vector.shape_cast %6 : vector<8x2x7xf32> to vector<16x7xf32>
    %cst = arith.constant dense<0.000000e+00> : vector<16x64xf32>
    %8 = tpu.matmul %7, %0, %cst {dimension_numbers = #tpu.dot_dimension_numbers<[1], [0], [0], [1], [0, 0, 1, 1], [], []>, precision = #tpu.contract_precision<fp32>} : vector<16x7xf32>, vector<7x64xf32>, vector<16x64xf32> -> vector<16x64xf32>
    %9 = vector.broadcast %2 : vector<1x64xf32> to vector<16x64xf32>
    %10 = arith.addf %8, %9 : vector<16x64xf32>
    %11 = tpu.iota {dimensions = array<i32: 1>} : vector<2x64xi32>
    %c32_i32 = arith.constant 32 : i32
    %12 = vector.broadcast %c32_i32 : i32 to vector<2x64xi32>
    %13 = arith.cmpi sge, %11, %12 : vector<2x64xi32>
    %c48_i32 = arith.constant 48 : i32
    %14 = vector.broadcast %c48_i32 : i32 to vector<2x64xi32>
    %15 = arith.cmpi slt, %11, %14 : vector<2x64xi32>
    %16 = arith.andi %13, %15 : vector<2x64xi1>
    %cst_8 = arith.constant 0.000000e+00 : f32
    %17 = vector.broadcast %cst_8 : f32 to vector<2x16xf32>
    %cst_9 = arith.constant 0.000000e+00 : f32
    %18 = vector.broadcast %cst_9 : f32 to vector<2x16xf32>
    %cst_10 = arith.constant dense<0.000000e+00> : vector<2x64xf32>
    %19 = tpu.matmul %17, %1, %cst_10 {dimension_numbers = #tpu.dot_dimension_numbers<[1], [0], [0], [1], [0, 0, 1, 1], [], []>, precision = #tpu.contract_precision<fp32>} : vector<2x16xf32>, vector<16x64xf32>, vector<2x64xf32> -> vector<2x64xf32>
    %20 = vector.extract_strided_slice %10 {offsets = [0, 0], sizes = [2, 64], strides = [1, 1]} : vector<16x64xf32> to vector<2x64xf32>
    %21 = arith.addf %19, %20 : vector<2x64xf32>
    %22 = arith.negf %21 : vector<2x64xf32>
    %23 = math.exp %22 : vector<2x64xf32>
    %cst_11 = arith.constant 1.000000e+00 : f32
    %24 = vector.broadcast %cst_11 : f32 to vector<2x64xf32>
    %25 = arith.addf %24, %23 : vector<2x64xf32>
    %26 = arith.divf %24, %25 : vector<2x64xf32>
    %27 = math.tanh %21 : vector<2x64xf32>
    %28 = arith.select %16, %27, %26 : vector<2x64xi1>, vector<2x64xf32>
    %29 = vector.extract_strided_slice %28 {offsets = [0, 0], sizes = [2, 16], strides = [1, 1]} : vector<2x64xf32> to vector<2x16xf32>
    %30 = vector.extract_strided_slice %28 {offsets = [0, 16], sizes = [2, 16], strides = [1, 1]} : vector<2x64xf32> to vector<2x16xf32>
    %31 = vector.extract_strided_slice %28 {offsets = [0, 32], sizes = [2, 16], strides = [1, 1]} : vector<2x64xf32> to vector<2x16xf32>
    %32 = vector.extract_strided_slice %28 {offsets = [0, 48], sizes = [2, 16], strides = [1, 1]} : vector<2x64xf32> to vector<2x16xf32>
    %33 = arith.mulf %30, %18 : vector<2x16xf32>
    %34 = arith.mulf %29, %31 : vector<2x16xf32>
    %35 = arith.addf %33, %34 : vector<2x16xf32>
    %36 = math.tanh %35 : vector<2x16xf32>
    %37 = arith.mulf %32, %36 : vector<2x16xf32>
    %cst_12 = arith.constant dense<0.000000e+00> : vector<2x64xf32>
    %38 = tpu.matmul %37, %1, %cst_12 {dimension_numbers = #tpu.dot_dimension_numbers<[1], [0], [0], [1], [0, 0, 1, 1], [], []>, precision = #tpu.contract_precision<fp32>} : vector<2x16xf32>, vector<16x64xf32>, vector<2x64xf32> -> vector<2x64xf32>
    %39 = vector.extract_strided_slice %10 {offsets = [2, 0], sizes = [2, 64], strides = [1, 1]} : vector<16x64xf32> to vector<2x64xf32>
    %40 = arith.addf %38, %39 : vector<2x64xf32>
    %41 = arith.negf %40 : vector<2x64xf32>
    %42 = math.exp %41 : vector<2x64xf32>
    %cst_13 = arith.constant 1.000000e+00 : f32
    %43 = vector.broadcast %cst_13 : f32 to vector<2x64xf32>
    %44 = arith.addf %43, %42 : vector<2x64xf32>
    %45 = arith.divf %43, %44 : vector<2x64xf32>
    %46 = math.tanh %40 : vector<2x64xf32>
    %47 = arith.select %16, %46, %45 : vector<2x64xi1>, vector<2x64xf32>
    %48 = vector.extract_strided_slice %47 {offsets = [0, 0], sizes = [2, 16], strides = [1, 1]} : vector<2x64xf32> to vector<2x16xf32>
    %49 = vector.extract_strided_slice %47 {offsets = [0, 16], sizes = [2, 16], strides = [1, 1]} : vector<2x64xf32> to vector<2x16xf32>
    %50 = vector.extract_strided_slice %47 {offsets = [0, 32], sizes = [2, 16], strides = [1, 1]} : vector<2x64xf32> to vector<2x16xf32>
    %51 = vector.extract_strided_slice %47 {offsets = [0, 48], sizes = [2, 16], strides = [1, 1]} : vector<2x64xf32> to vector<2x16xf32>
    %52 = arith.mulf %49, %35 : vector<2x16xf32>
    %53 = arith.mulf %48, %50 : vector<2x16xf32>
    %54 = arith.addf %52, %53 : vector<2x16xf32>
    %55 = math.tanh %54 : vector<2x16xf32>
    %56 = arith.mulf %51, %55 : vector<2x16xf32>
    %cst_14 = arith.constant dense<0.000000e+00> : vector<2x64xf32>
    %57 = tpu.matmul %56, %1, %cst_14 {dimension_numbers = #tpu.dot_dimension_numbers<[1], [0], [0], [1], [0, 0, 1, 1], [], []>, precision = #tpu.contract_precision<fp32>} : vector<2x16xf32>, vector<16x64xf32>, vector<2x64xf32> -> vector<2x64xf32>
    %58 = vector.extract_strided_slice %10 {offsets = [4, 0], sizes = [2, 64], strides = [1, 1]} : vector<16x64xf32> to vector<2x64xf32>
    %59 = arith.addf %57, %58 : vector<2x64xf32>
    %60 = arith.negf %59 : vector<2x64xf32>
    %61 = math.exp %60 : vector<2x64xf32>
    %cst_15 = arith.constant 1.000000e+00 : f32
    %62 = vector.broadcast %cst_15 : f32 to vector<2x64xf32>
    %63 = arith.addf %62, %61 : vector<2x64xf32>
    %64 = arith.divf %62, %63 : vector<2x64xf32>
    %65 = math.tanh %59 : vector<2x64xf32>
    %66 = arith.select %16, %65, %64 : vector<2x64xi1>, vector<2x64xf32>
    %67 = vector.extract_strided_slice %66 {offsets = [0, 0], sizes = [2, 16], strides = [1, 1]} : vector<2x64xf32> to vector<2x16xf32>
    %68 = vector.extract_strided_slice %66 {offsets = [0, 16], sizes = [2, 16], strides = [1, 1]} : vector<2x64xf32> to vector<2x16xf32>
    %69 = vector.extract_strided_slice %66 {offsets = [0, 32], sizes = [2, 16], strides = [1, 1]} : vector<2x64xf32> to vector<2x16xf32>
    %70 = vector.extract_strided_slice %66 {offsets = [0, 48], sizes = [2, 16], strides = [1, 1]} : vector<2x64xf32> to vector<2x16xf32>
    %71 = arith.mulf %68, %54 : vector<2x16xf32>
    %72 = arith.mulf %67, %69 : vector<2x16xf32>
    %73 = arith.addf %71, %72 : vector<2x16xf32>
    %74 = math.tanh %73 : vector<2x16xf32>
    %75 = arith.mulf %70, %74 : vector<2x16xf32>
    %cst_16 = arith.constant dense<0.000000e+00> : vector<2x64xf32>
    %76 = tpu.matmul %75, %1, %cst_16 {dimension_numbers = #tpu.dot_dimension_numbers<[1], [0], [0], [1], [0, 0, 1, 1], [], []>, precision = #tpu.contract_precision<fp32>} : vector<2x16xf32>, vector<16x64xf32>, vector<2x64xf32> -> vector<2x64xf32>
    %77 = vector.extract_strided_slice %10 {offsets = [6, 0], sizes = [2, 64], strides = [1, 1]} : vector<16x64xf32> to vector<2x64xf32>
    %78 = arith.addf %76, %77 : vector<2x64xf32>
    %79 = arith.negf %78 : vector<2x64xf32>
    %80 = math.exp %79 : vector<2x64xf32>
    %cst_17 = arith.constant 1.000000e+00 : f32
    %81 = vector.broadcast %cst_17 : f32 to vector<2x64xf32>
    %82 = arith.addf %81, %80 : vector<2x64xf32>
    %83 = arith.divf %81, %82 : vector<2x64xf32>
    %84 = math.tanh %78 : vector<2x64xf32>
    %85 = arith.select %16, %84, %83 : vector<2x64xi1>, vector<2x64xf32>
    %86 = vector.extract_strided_slice %85 {offsets = [0, 0], sizes = [2, 16], strides = [1, 1]} : vector<2x64xf32> to vector<2x16xf32>
    %87 = vector.extract_strided_slice %85 {offsets = [0, 16], sizes = [2, 16], strides = [1, 1]} : vector<2x64xf32> to vector<2x16xf32>
    %88 = vector.extract_strided_slice %85 {offsets = [0, 32], sizes = [2, 16], strides = [1, 1]} : vector<2x64xf32> to vector<2x16xf32>
    %89 = vector.extract_strided_slice %85 {offsets = [0, 48], sizes = [2, 16], strides = [1, 1]} : vector<2x64xf32> to vector<2x16xf32>
    %90 = arith.mulf %87, %73 : vector<2x16xf32>
    %91 = arith.mulf %86, %88 : vector<2x16xf32>
    %92 = arith.addf %90, %91 : vector<2x16xf32>
    %93 = math.tanh %92 : vector<2x16xf32>
    %94 = arith.mulf %89, %93 : vector<2x16xf32>
    %cst_18 = arith.constant dense<0.000000e+00> : vector<2x64xf32>
    %95 = tpu.matmul %94, %1, %cst_18 {dimension_numbers = #tpu.dot_dimension_numbers<[1], [0], [0], [1], [0, 0, 1, 1], [], []>, precision = #tpu.contract_precision<fp32>} : vector<2x16xf32>, vector<16x64xf32>, vector<2x64xf32> -> vector<2x64xf32>
    %96 = vector.extract_strided_slice %10 {offsets = [8, 0], sizes = [2, 64], strides = [1, 1]} : vector<16x64xf32> to vector<2x64xf32>
    %97 = arith.addf %95, %96 : vector<2x64xf32>
    %98 = arith.negf %97 : vector<2x64xf32>
    %99 = math.exp %98 : vector<2x64xf32>
    %cst_19 = arith.constant 1.000000e+00 : f32
    %100 = vector.broadcast %cst_19 : f32 to vector<2x64xf32>
    %101 = arith.addf %100, %99 : vector<2x64xf32>
    %102 = arith.divf %100, %101 : vector<2x64xf32>
    %103 = math.tanh %97 : vector<2x64xf32>
    %104 = arith.select %16, %103, %102 : vector<2x64xi1>, vector<2x64xf32>
    %105 = vector.extract_strided_slice %104 {offsets = [0, 0], sizes = [2, 16], strides = [1, 1]} : vector<2x64xf32> to vector<2x16xf32>
    %106 = vector.extract_strided_slice %104 {offsets = [0, 16], sizes = [2, 16], strides = [1, 1]} : vector<2x64xf32> to vector<2x16xf32>
    %107 = vector.extract_strided_slice %104 {offsets = [0, 32], sizes = [2, 16], strides = [1, 1]} : vector<2x64xf32> to vector<2x16xf32>
    %108 = vector.extract_strided_slice %104 {offsets = [0, 48], sizes = [2, 16], strides = [1, 1]} : vector<2x64xf32> to vector<2x16xf32>
    %109 = arith.mulf %106, %92 : vector<2x16xf32>
    %110 = arith.mulf %105, %107 : vector<2x16xf32>
    %111 = arith.addf %109, %110 : vector<2x16xf32>
    %112 = math.tanh %111 : vector<2x16xf32>
    %113 = arith.mulf %108, %112 : vector<2x16xf32>
    %cst_20 = arith.constant dense<0.000000e+00> : vector<2x64xf32>
    %114 = tpu.matmul %113, %1, %cst_20 {dimension_numbers = #tpu.dot_dimension_numbers<[1], [0], [0], [1], [0, 0, 1, 1], [], []>, precision = #tpu.contract_precision<fp32>} : vector<2x16xf32>, vector<16x64xf32>, vector<2x64xf32> -> vector<2x64xf32>
    %115 = vector.extract_strided_slice %10 {offsets = [10, 0], sizes = [2, 64], strides = [1, 1]} : vector<16x64xf32> to vector<2x64xf32>
    %116 = arith.addf %114, %115 : vector<2x64xf32>
    %117 = arith.negf %116 : vector<2x64xf32>
    %118 = math.exp %117 : vector<2x64xf32>
    %cst_21 = arith.constant 1.000000e+00 : f32
    %119 = vector.broadcast %cst_21 : f32 to vector<2x64xf32>
    %120 = arith.addf %119, %118 : vector<2x64xf32>
    %121 = arith.divf %119, %120 : vector<2x64xf32>
    %122 = math.tanh %116 : vector<2x64xf32>
    %123 = arith.select %16, %122, %121 : vector<2x64xi1>, vector<2x64xf32>
    %124 = vector.extract_strided_slice %123 {offsets = [0, 0], sizes = [2, 16], strides = [1, 1]} : vector<2x64xf32> to vector<2x16xf32>
    %125 = vector.extract_strided_slice %123 {offsets = [0, 16], sizes = [2, 16], strides = [1, 1]} : vector<2x64xf32> to vector<2x16xf32>
    %126 = vector.extract_strided_slice %123 {offsets = [0, 32], sizes = [2, 16], strides = [1, 1]} : vector<2x64xf32> to vector<2x16xf32>
    %127 = vector.extract_strided_slice %123 {offsets = [0, 48], sizes = [2, 16], strides = [1, 1]} : vector<2x64xf32> to vector<2x16xf32>
    %128 = arith.mulf %125, %111 : vector<2x16xf32>
    %129 = arith.mulf %124, %126 : vector<2x16xf32>
    %130 = arith.addf %128, %129 : vector<2x16xf32>
    %131 = math.tanh %130 : vector<2x16xf32>
    %132 = arith.mulf %127, %131 : vector<2x16xf32>
    %cst_22 = arith.constant dense<0.000000e+00> : vector<2x64xf32>
    %133 = tpu.matmul %132, %1, %cst_22 {dimension_numbers = #tpu.dot_dimension_numbers<[1], [0], [0], [1], [0, 0, 1, 1], [], []>, precision = #tpu.contract_precision<fp32>} : vector<2x16xf32>, vector<16x64xf32>, vector<2x64xf32> -> vector<2x64xf32>
    %134 = vector.extract_strided_slice %10 {offsets = [12, 0], sizes = [2, 64], strides = [1, 1]} : vector<16x64xf32> to vector<2x64xf32>
    %135 = arith.addf %133, %134 : vector<2x64xf32>
    %136 = arith.negf %135 : vector<2x64xf32>
    %137 = math.exp %136 : vector<2x64xf32>
    %cst_23 = arith.constant 1.000000e+00 : f32
    %138 = vector.broadcast %cst_23 : f32 to vector<2x64xf32>
    %139 = arith.addf %138, %137 : vector<2x64xf32>
    %140 = arith.divf %138, %139 : vector<2x64xf32>
    %141 = math.tanh %135 : vector<2x64xf32>
    %142 = arith.select %16, %141, %140 : vector<2x64xi1>, vector<2x64xf32>
    %143 = vector.extract_strided_slice %142 {offsets = [0, 0], sizes = [2, 16], strides = [1, 1]} : vector<2x64xf32> to vector<2x16xf32>
    %144 = vector.extract_strided_slice %142 {offsets = [0, 16], sizes = [2, 16], strides = [1, 1]} : vector<2x64xf32> to vector<2x16xf32>
    %145 = vector.extract_strided_slice %142 {offsets = [0, 32], sizes = [2, 16], strides = [1, 1]} : vector<2x64xf32> to vector<2x16xf32>
    %146 = vector.extract_strided_slice %142 {offsets = [0, 48], sizes = [2, 16], strides = [1, 1]} : vector<2x64xf32> to vector<2x16xf32>
    %147 = arith.mulf %144, %130 : vector<2x16xf32>
    %148 = arith.mulf %143, %145 : vector<2x16xf32>
    %149 = arith.addf %147, %148 : vector<2x16xf32>
    %150 = math.tanh %149 : vector<2x16xf32>
    %151 = arith.mulf %146, %150 : vector<2x16xf32>
    %cst_24 = arith.constant dense<0.000000e+00> : vector<2x64xf32>
    %152 = tpu.matmul %151, %1, %cst_24 {dimension_numbers = #tpu.dot_dimension_numbers<[1], [0], [0], [1], [0, 0, 1, 1], [], []>, precision = #tpu.contract_precision<fp32>} : vector<2x16xf32>, vector<16x64xf32>, vector<2x64xf32> -> vector<2x64xf32>
    %153 = vector.extract_strided_slice %10 {offsets = [14, 0], sizes = [2, 64], strides = [1, 1]} : vector<16x64xf32> to vector<2x64xf32>
    %154 = arith.addf %152, %153 : vector<2x64xf32>
    %155 = arith.negf %154 : vector<2x64xf32>
    %156 = math.exp %155 : vector<2x64xf32>
    %cst_25 = arith.constant 1.000000e+00 : f32
    %157 = vector.broadcast %cst_25 : f32 to vector<2x64xf32>
    %158 = arith.addf %157, %156 : vector<2x64xf32>
    %159 = arith.divf %157, %158 : vector<2x64xf32>
    %160 = math.tanh %154 : vector<2x64xf32>
    %161 = arith.select %16, %160, %159 : vector<2x64xi1>, vector<2x64xf32>
    %162 = vector.extract_strided_slice %161 {offsets = [0, 0], sizes = [2, 16], strides = [1, 1]} : vector<2x64xf32> to vector<2x16xf32>
    %163 = vector.extract_strided_slice %161 {offsets = [0, 16], sizes = [2, 16], strides = [1, 1]} : vector<2x64xf32> to vector<2x16xf32>
    %164 = vector.extract_strided_slice %161 {offsets = [0, 32], sizes = [2, 16], strides = [1, 1]} : vector<2x64xf32> to vector<2x16xf32>
    %165 = vector.extract_strided_slice %161 {offsets = [0, 48], sizes = [2, 16], strides = [1, 1]} : vector<2x64xf32> to vector<2x16xf32>
    %166 = arith.mulf %163, %149 : vector<2x16xf32>
    %167 = arith.mulf %162, %164 : vector<2x16xf32>
    %168 = arith.addf %166, %167 : vector<2x16xf32>
    %169 = math.tanh %168 : vector<2x16xf32>
    %170 = arith.mulf %165, %169 : vector<2x16xf32>
    %cst_26 = arith.constant dense<0.000000e+00> : vector<2x7xf32>
    %171 = tpu.matmul %170, %3, %cst_26 {dimension_numbers = #tpu.dot_dimension_numbers<[1], [0], [0], [1], [0, 0, 1, 1], [], []>, precision = #tpu.contract_precision<fp32>} : vector<2x16xf32>, vector<16x7xf32>, vector<2x7xf32> -> vector<2x7xf32>
    %172 = vector.broadcast %4 : vector<1x7xf32> to vector<2x7xf32>
    %173 = arith.addf %171, %172 : vector<2x7xf32>
    %cst_27 = arith.constant dense<0xFF800000> : vector<2xf32>
    %174 = vector.multi_reduction <maximumf>, %173, %cst_27 [1] : vector<2x7xf32> to vector<2xf32>
    %175 = vector.shape_cast %174 : vector<2xf32> to vector<2x1xf32>
    %176 = vector.broadcast %175 : vector<2x1xf32> to vector<2x7xf32>
    %177 = arith.subf %173, %176 : vector<2x7xf32>
    %178 = math.exp %177 : vector<2x7xf32>
    %cst_28 = arith.constant dense<0.000000e+00> : vector<2xf32>
    %179 = vector.multi_reduction <add>, %178, %cst_28 [1] : vector<2x7xf32> to vector<2xf32>
    %180 = vector.shape_cast %179 : vector<2xf32> to vector<2x1xf32>
    %181 = tpu.reciprocal %180 : vector<2x1xf32> -> vector<2x1xf32>
    %182 = vector.broadcast %181 : vector<2x1xf32> to vector<2x7xf32>
    %183 = arith.mulf %178, %182 : vector<2x7xf32>
    %c0_29 = arith.constant 0 : index
    %c0_30 = arith.constant 0 : index
    %184 = vector.load %arg2[%c0_29, %c0_30] : memref<2x7xf32, #tpu.memory_space<vmem>>, vector<2x7xf32>
    tpu.vector_store %arg2[%c0_29, %c0_30], %183 {strides = array<i32>} : memref<2x7xf32, #tpu.memory_space<vmem>>, vector<2x7xf32>,
    return
  }
}

</mosaic_0001>

<bundles_post_ra>
// kernel: lstm_recognizer_forward.1
= control target key start
LH: loop header
LB: loop body
LE: loop exit
PB: predicated region body
PF: predicated region fallthrough
CT: control target
= control target key end

     0   :  { %7 = vsyncpa [#allocation3], 0  ;;  %s6305_s0 = inlined_call_operand.vmem [shape: f32[2,8,7], index: 0, kind: input, shape index: {}]   ;;  %s6306_s1 = inlined_call_operand.hbm [shape: f32[56,128], index: 1, kind: input, shape index: {}]   ;;  %s6307_s2 = inlined_call_operand.hbm [shape: f32[2,7], index: 2, kind: output, shape index: {}]  }
   0x1   :  { %8 = vsyncpa [#allocation4], 0  ;;  %s5793_s9 = smov [#allocation2]  }
   0x2   :  { %s16_s10 = sshll.u32 %s5793_s9, 4  ;;  %s17_s10 = int_to_ptr.vmem [resolvable:$true] %s16_s10 }
   0x3   :  { %s5757_s11 = scalar_lea.vmem %s17_s10, 896  ;;  %p5762_p1 = scmp.lt.s32.totalorder %s17_s10, %s17_s10 }
   0x4   :  { %p5758_p0 = scmp.ne.s32.totalorder %s17_s10, %s5757_s11  ;;  %p5763_p2 = scmp.lt.s32.totalorder %s5757_s11, %s5757_s11 }
   0x6   :  { %p5764_p3 = por %p5763_p2, %p5762_p1 }
   0x8   :  { %p5765_p4 = pnand %p5764_p3, %p5758_p0 }
   0xa   :  { %5768 = shalt.err (!%p5765_p4)
}
   0xb   :  { %s5794_s12 = smov 128   ;;  %s5795_s13 = smov 8  }
   0xc   :  { %22 = dma.hbm_to_vmem [thread:$0]  %s6306_s1, 896, %s17_s10, [#allocation3], %s5794_s12, %s5794_s12, %s5795_s13  }
   0xd   :  { %5789 = dma.done.wait [#allocation3], 896  }
   0xe   :  { %5790 = vsyncadd [#allocation3], 4294966400  ;;  %v39_v0 = vlaneseq  ;;  %v5796_v1 = vmov 1983009808   ;;  %v5797_v4 = vmov 1934713408  }
   0xf   :  { %v37_v2 = vunpack.c.l.s4 %v5796_v1  ;;  %v68_v5 = vunpack.c.l.s4 %v5797_v4  ;;  %vm152_vm0 = vcmask 1046528   ;;  %v26_v9 = vld [vmem:[#allocation2] sm:$0x7f]  ;;  %v34_v12 = vld [vmem:[%s6305_s0 + $0x8] sm:$0xff]  ;;  %v5798_v14 = vmov 0.0   ;;  %v28_v30 = vld [vmem:[#allocation2 + $0x10] sm:$0xff] }
  0x10   :  { %v40_v3 = vshrl.u32 %v39_v0, 7  ;;  %v154_v10 = vsel %vm152_vm0, %v26_v9, 0  ;;  %v33_v11 = vld [vmem:[%s6305_s0] sm:$0xff]  ;;  %v50_v17 = vcombine.high %v34_v12, %v5798_v14  ;;  %v27_v36 = vld [vmem:[#allocation2 + $0x8] sm:$0xff]  ;;  %v5849_v40 = vand.u32 4294901760, %v28_v30  ;;  %s5800_s0 = smov 96  }
  0x11   :  { %v38_v6 = vunpack.c.0.s8 %v37_v2  ;;  %v69_v8 = vunpack.c.0.s8 %v68_v5  ;;  %v5830_v13 = vand.u32 4294901760, %v154_v10  ;;  %v35_v15 = vcombine.high %v33_v11, %v5798_v14  ;;  %s5801_s19 = smov 16   ;;  %s5802_s20 = smov 32  }
  0x12   :  { %v5851_v45 = vand.u32 4294901760, %v27_v36  ;;  %vm147_vm1 = vcmask 56320   ;;  %v5855_v51 = vsub.f32 %v28_v30, %v5849_v40  ;;  %vm5799_vm2 = vmmov 0   ;;  %s5803_s21 = smov 80   ;;  %s5804_s22 = smov [#allocation5]  }
  0x13   :  { %v41_v7 = vsub.s32 %v38_v6, %v40_v3  ;;  %v72_v19 = vsub.s32 %v69_v8, %v40_v3  ;;  %5261 = vmatprep.subr.mxu0 %v5830_v13  ;;  %v5836_v20 = vsub.f32 %v154_v10, %v5830_v13  ;;  %vm650_vm6 = vcmask 130048   ;;  %s5062_s23 = sshll.u32 %s5804_s22, 4  ;;  %s5063_s23 = int_to_ptr.vmem [resolvable:$true] %s5062_s23 }
  0x14   :  { %5262 = vmatpush3.msra.mxu0 %v5830_v13  ;;  %v5858_v54 = vsub.f32 %v27_v36, %v5851_v45  ;;  %v5861_v58 = vand.u32 4294901760, %v5855_v51  ;;  %vm5043_vm7 = vcmask 50176   ;;  %s5769_s24 = scalar_lea.vmem %s5063_s23, 32  ;;  %p5774_p6 = scmp.lt.s32.totalorder %s5063_s23, %s5063_s23 }
  0x15   :  { %v42_v16 = vrot.slane %v33_v11, %v41_v7  ;;  %v57_v18 = vrot.slane %v34_v12, %v41_v7  ;;  %v49_v21 = vrot.slane %v35_v15, %v41_v7  ;;  %v64_v22 = vrot.slane %v50_v17, %v41_v7  ;;  %5271 = vmatprep.subr.mxu0 %v5836_v20  ;;  %v5071_v12 = vld [vmem:[#allocation2 + $0x18] ss:$0 sm:$0xff]  ;;  %p5770_p5 = scmp.ne.s32.totalorder %s5063_s23, %s5769_s24  ;;  %p5775_p7 = scmp.lt.s32.totalorder %s5769_s24, %s5769_s24 }
  0x16   :  { %v5840_v25 = vand.u32 4294901760, %v5836_v20  ;;  %v5864_v61 = vand.u32 4294901760, %v5858_v54  ;;  %v763_v1 = vsub.f32 %v5855_v51, %v5861_v58 }
  0x17   :  { %v65_v23 = vcombine.low %v42_v16, %v57_v18  ;;  %v66_v24 = vcombine.high %v42_v16, %v57_v18  ;;  %v81_v26 = vcombine.low %v49_v21, %v64_v22  ;;  %v82_v27 = vcombine.high %v49_v21, %v64_v22  ;;  %p5776_p8 = por %p5775_p7, %p5774_p6 }
  0x18   :  { %v276_v31 = vsub.f32 %v5836_v20, %v5840_v25  ;;  %v770_v4 = vsub.f32 %v5858_v54, %v5864_v61 }
  0x19   :  { %v73_v28 = vrot.slane %v65_v23, %v72_v19  ;;  %v80_v29 = vrot.slane %v66_v24, %v72_v19  ;;  %v89_v32 = vrot.slane %v81_v26, %v72_v19  ;;  %v96_v33 = vrot.slane %v82_v27, %v72_v19  ;;  %p5777_p9 = pnand %p5776_p8, %p5770_p5 }
  0x1a   :  { %v277_v37 = vand.u32 4294901760, %v276_v31  ;;  %v5876_v8 = vand.u32 4294901760, %v770_v4 }
  0x1b   :  { %v97_v34 = vcombine.high %v73_v28, %v5798_v14  ;;  %v98_v35 = vcombine.high %v80_v29, %v5798_v14  ;;  %v99_v38 = vcombine.high %v89_v32, %v5798_v14  ;;  %v100_v39 = vcombine.high %v96_v33, %v5798_v14 }
  0x1c   :  { %5266 = vmatprep.subr.mxu1 %v277_v37 }
  0x1d   :  { %v113_v41 = vcombine.low %v73_v28, %v97_v34  ;;  %v114_v42 = vcombine.low %v80_v29, %v98_v35  ;;  %v130_v43 = vcombine.low %v89_v32, %v99_v38  ;;  %v131_v44 = vcombine.low %v96_v33, %v100_v39  ;;  %5267 = vmatpush3.msra.mxu1 %v277_v37 }
  0x1e   :  { %5276 = vmatprep.subr.mxu1 %v5830_v13 }
  0x1f   :  { %v121_v46 = vrot.slane %v113_v41, %v41_v7  ;;  %v128_v47 = vrot.slane %v114_v42, %v41_v7  ;;  %v138_v48 = vrot.slane %v130_v43, %v41_v7  ;;  %v145_v49 = vrot.slane %v131_v44, %v41_v7 }
  0x20   :  { %v5874_v7 = vand.u32 4294901760, %v763_v1 }
  0x21   :  { %v129_v50 = vcombine.low %v121_v46, %v128_v47  ;;  %v146_v52 = vcombine.low %v138_v48, %v145_v49 }
  0x23   :  { %v148_v53 = vsel %vm147_vm1, %v129_v50, 0  ;;  %v150_v55 = vsel %vm147_vm1, %v146_v52, 0 }
  0x24   :  { %v222_v56 = vand.u32 4294901760, %v148_v53  ;;  %v232_v57 = vand.u32 4294901760, %v150_v55 }
  0x26   :  { %v223_v59 = vsub.f32 %v148_v53, %v222_v56  ;;  %5268 = vmatprep.mubr.f32.mxu1 %v222_v56  ;;  %v233_v60 = vsub.f32 %v150_v55, %v232_v57 }
  0x27   :  { %5269 = vmatmul.mubr.f32.vlgmr.msra.gmra.mxu1 %v232_v57 }
  0x28   :  { %v224_v62 = vand.u32 4294901760, %v223_v59  ;;  %5277 = vmatpush3.msra.mxu1 %v5830_v13  ;;  %v234_v63 = vand.u32 4294901760, %v233_v60 }
  0x29   :  { %5286 = vmatprep.subr.mxu1 %v5830_v13 }
  0x2a   :  { %v225_v2 = vsub.f32 %v223_v59, %v224_v62  ;;  %5278 = vmatprep.mubr.f32.mxu1 %v224_v62  ;;  %v235_v3 = vsub.f32 %v233_v60, %v234_v63  ;;  %v646_v62 = vand.u32 127, %v39_v0 }
  0x2b   :  { %5279 = vmatmul.mubr.f32.vlgmr.msra.gmra.mxu1 %v234_v63 }
  0x2c   :  { %v226_v5 = vand.u32 4294901760, %v225_v2  ;;  %5287 = vmatpush3.msra.mxu1 %v5830_v13  ;;  %5288 = vmatprep.mubr.f32.mxu1 %v222_v56  ;;  %v236_v6 = vand.u32 4294901760, %v235_v3  ;;  %vm647_vm3 = vcmp.ge.s32.totalorder %v646_v62, 32  ;;  %vm648_vm4 = vcmp.lt.s32.totalorder %v646_v62, 48 }
  0x2d   :  { %5298 = vmatprep.subr.mxu1 %v5798_v14  ;;  %vm5942_vm5 = vmand %vm647_vm3, %vm648_vm4 }
  0x2e   :  { %5263 = vmatprep.mubr.f32.mxu0 %v226_v5 }
  0x2f   :  { %5264 = vmatmul.mubr.f32.vlgmr.msra.gmra.mxu0 %v236_v6  ;;  %5289 = vmatmul.mubr.f32.vlgmr.msra.gmra.mxu1 %v232_v57 }
  0x30   :  { %5272 = vmatpush3.msra.mxu0 %v5836_v20  ;;  %5273 = vmatprep.mubr.f32.mxu0 %v223_v59 }
  0x31   :  { %5281 = vmatprep.subr.mxu0 %v5840_v25  ;;  %5299 = vmatpush3.msra.mxu1 %v5874_v7 }
  0x32   :  { %5300 = vmatprep.subr.mxu1 %v5798_v14  ;;  %5302 = vmatprep.mubr.msk.f32.mxu1 %vm5799_vm2, %v5798_v14 }
  0x33   :  { %5274 = vmatmul.mubr.f32.vlgmr.msra.gmra.mxu0 %v233_v60  ;;  %5301 = vmatpush3.msra.mxu1 %v5876_v8 }
  0x34   :  { %5282 = vmatpush3.msra.mxu0 %v5840_v25  ;;  %5283 = vmatprep.mubr.f32.mxu0 %v222_v56 }
  0x35   :  { %5291 = vmatprep.subr.mxu0 %v5798_v14  ;;  %5303 = vmatmul.mubr.f32.vlgmr.msra.gmra.mxu1 %v5798_v14 }
  0x36   :  { %5312 = vmatprep.subr.mxu1 %v5798_v14  ;;  %5316 = vmatprep.mubr.msk.f32.mxu1 %vm5799_vm2, %v5798_v14 }
  0x37   :  { %5284 = vmatmul.mubr.f32.vlgmr.msra.gmra.mxu0 %v232_v57  ;;  %5313 = vmatpush3.msra.mxu1 %v5849_v40 }
  0x38   :  { %5292 = vmatpush3.msra.mxu0 %v5849_v40  ;;  %5295 = vmatprep.mubr.msk.f32.mxu0 %vm5799_vm2, %v5798_v14 }
  0x39   :  { %5293 = vmatprep.subr.mxu0 %v5798_v14  ;;  %5314 = vmatprep.subr.mxu1 %v5798_v14 }
  0x3a   :  { %5294 = vmatpush3.msra.mxu0 %v5851_v45  ;;  %5315 = vmatpush3.msra.mxu1 %v5851_v45 }
  0x3b   :  { %5296 = vmatmul.mubr.f32.vlgmr.msra.gmra.mxu0 %v5798_v14  ;;  %5305 = vmatprep.subr.mxu0 %v5798_v14 }
  0x3c   :  { %5306 = vmatpush3.msra.mxu0 %v5855_v51  ;;  %5309 = vmatprep.mubr.msk.f32.mxu0 %vm5799_vm2, %v5798_v14 }
  0x3d   :  { %5307 = vmatprep.subr.mxu0 %v5798_v14  ;;  %5317 = vmatmul.mubr.f32.vlgmr.msra.gmra.mxu1 %v5798_v14 }
  0x3e   :  { %5308 = vmatpush3.msra.mxu0 %v5858_v54  ;;  %5326 = vmatprep.subr.mxu1 %v5798_v14 }
  0x3f   :  { %5310 = vmatmul.mubr.f32.vlgmr.msra.gmra.mxu0 %v5798_v14  ;;  %5319 = vmatprep.subr.mxu0 %v5798_v14 }
  0x40   :  { %5320 = vmatpush3.msra.mxu0 %v5861_v58  ;;  %5323 = vmatprep.mubr.msk.f32.mxu0 %vm5799_vm2, %v5798_v14 }
  0x41   :  { %5321 = vmatprep.subr.mxu0 %v5798_v14  ;;  %5327 = vmatpush3.msra.mxu1 %v5849_v40 }
  0x42   :  { %5322 = vmatpush3.msra.mxu0 %v5864_v61  ;;  %5328 = vmatprep.subr.mxu1 %v5798_v14 }
  0x43   :  { %5324 = vmatmul.mubr.f32.vlgmr.msra.gmra.mxu0 %v5798_v14  ;;  %5329 = vmatpush3.msra.mxu1 %v5851_v45 }
  0x44   :  { %5330 = vmatprep.mubr.msk.f32.mxu1 %vm5799_vm2, %v5798_v14  ;;  %5340 = vmatprep.subr.mxu1 %v5798_v14 }
  0x45   :  { %5331 = vmatmul.mubr.f32.vlgmr.msra.gmra.mxu1 %v5798_v14  ;;  %5333 = vmatprep.subr.mxu0 %v5798_v14 }
  0x46   :  { %5341 = vmatpush3.msra.mxu1 %v5874_v7  ;;  %5344 = vmatprep.mubr.msk.f32.mxu1 %vm5799_vm2, %v5798_v14 }
  0x47   :  { %5342 = vmatprep.subr.mxu1 %v5798_v14  ;;  %5334 = vmatpush3.msra.mxu0 %v5849_v40 }
  0x48   :  { %5343 = vmatpush3.msra.mxu1 %v5876_v8  ;;  %5335 = vmatprep.subr.mxu0 %v5798_v14 }
  0x49   :  { %5354 = vmatprep.subr.mxu1 %v5798_v14  ;;  %5336 = vmatpush3.msra.mxu0 %v5851_v45 }
  0x4a   :  { %5337 = vmatprep.mubr.msk.f32.mxu0 %vm5799_vm2, %v5798_v14  ;;  %5347 = vmatprep.subr.mxu0 %v5798_v14 }
  0xe7   :  { %v5270_v9 = vpop.f32.mrf.mxu1 }
  0xe9   :  { %v314_v10 = vpop.f32.mrf.mxu1 }
  0xeb   :  { %v5280_v11 = vpop.f32.mrf.mxu1 }
  0xed   :  { %v475_v13 = vpop.f32.mrf.mxu1 }
  0xef   :  { %v5265_v15 = vpop.f32.mrf.mxu0  ;;  %v5290_v16 = vpop.f32.mrf.mxu1 }
  0xf0   :  { %v239_v17 = vadd.f32 %v5265_v15, %v5071_v12 }
  0xf1   :  { %v228_v18 = vpop.f32.mrf.mxu0  ;;  %v635_v22 = vpop.f32.mrf.mxu1 }
  0xf2   :  { %v321_v19 = vadd.f32 %v5270_v9, %v239_v17  ;;  %v229_v20 = vadd.f32 %v5071_v12, %v228_v18 }
  0xf3   :  { %v5275_v21 = vpop.f32.mrf.mxu0 }
  0xf4   :  { %v315_v23 = vadd.f32 %v314_v10, %v229_v20  ;;  %v402_v24 = vadd.f32 %v5275_v21, %v321_v19 }
  0xf5   :  { %v394_v25 = vpop.f32.mrf.mxu0  ;;  %v808_v26 = vpop.f32.mrf.mxu1 }
  0xf6   :  { %v484_v27 = vadd.f32 %v5280_v11, %v402_v24  ;;  %v395_v28 = vadd.f32 %v394_v25, %v315_v23 }
  0xf7   :  { %v5285_v29 = vpop.f32.mrf.mxu0  ;;  %v5304_v30 = vpop.f32.mrf.mxu1 }
  0xf8   :  { %v476_v31 = vadd.f32 %v475_v13, %v395_v28  ;;  %v564_v32 = vadd.f32 %v5285_v29, %v484_v27 }
  0xf9   :  { %v557_v33 = vpop.f32.mrf.mxu0 }
  0xfa   :  { %v5936_v34 = vadd.f32 %v5290_v16, %v564_v32  ;;  %v558_v35 = vadd.f32 %v557_v33, %v476_v31 }
  0xfb   :  { %v727_v36 = vpop.f32.mrf.mxu0 }
  0xfc   :  { %v5938_v37 = vadd.f32 %v635_v22, %v558_v35 }
  0xfd   :  { %v5297_v38 = vpop.f32.mrf.mxu0  ;;  %v959_v39 = vpop.f32.mrf.mxu1 }
  0xfe   :  { %v728_v41 = vadd.f32 %v727_v36, %v5938_v37  ;;  %v1142_v25 = vrot.slane %v5938_v37, 2 }
  0xff   :  { %v884_v42 = vpop.f32.mrf.mxu0  ;;  %v5318_v43 = vpop.f32.mrf.mxu1 }
 0x100   :  { %v809_v44 = vadd.f32 %v808_v26, %v728_v41 }
 0x101   :  { %v5311_v46 = vpop.f32.mrf.mxu0 }
 0x102   :  { %v885_v47 = vadd.f32 %v884_v42, %v809_v44 }
 0x103   :  { %v1036_v48 = vpop.f32.mrf.mxu0 }
 0x104   :  { %v960_v49 = vadd.f32 %v959_v39, %v885_v47 }
 0x105   :  { %v5325_v50 = vpop.f32.mrf.mxu0  ;;  %v1109_v52 = vpop.f32.mrf.mxu1 }
 0x106   :  { %v1037_v53 = vadd.f32 %v1036_v48, %v960_v49 }
 0x107   :  { %v5332_v55 = vpop.f32.mrf.mxu1 }
 0x108   :  { %v1110_v56 = vadd.f32 %v1109_v52, %v1037_v53 }
 0x10a   :  { %v5072_v57 = vmul.f32 -1.442695, %v1110_v56 }
 0x10c   :  { %5681 = vpow2.f32 %v5072_v57 }
 0x10d   :  { %5683 = vtanh.f32 %v1110_v56 }
 0x119   :  { %v5682_v59 = vpop.eup %5681 }
 0x11a   :  { %v1116_v60 = vadd.f32 1.0, %v5682_v59  ;;  %v5684_v1 = vpop.eup %5683 }
 0x11c   :  { %5685 = vrcp.f32 %v1116_v60 }
 0x129   :  { %v5686_v2 = vpop.eup %5685 }
 0x12a   :  { %v1120_v3 = vsel %vm5942_vm5, %v5684_v1, %v5686_v2 }
 0x12b   :  { %1123 = vrot.lane.b32.xlu0 %v1120_v3, %s5800_s0  ;;  %v1121_v0 = vmul.f32 0.0, %v1120_v3 }
 0x19d   :  { %v1124_v4 = vpop.permute.xlu0 %1123 }
 0x19e   :  { %v1126_v5 = vmul.f32 %v1124_v4, %v1120_v3 }
 0x1a0   :  { %1128 = vrot.lane.b32.xlu0 %v1126_v5, %s5801_s19 }
 0x212   :  { %v1129_v6 = vpop.permute.xlu0 %1128 }
 0x213   :  { %v5950_v9 = vadd.f32 %v1129_v6, %v1121_v0 }
 0x215   :  { %5687 = vtanh.f32 %v5950_v9 }
 0x222   :  { %v5688_v10 = vpop.eup %5687 }
 0x223   :  { %1134 = vrot.lane.b32.xlu1 %v5688_v10, %s5802_s20 }
 0x295   :  { %v1135_v11 = vpop.permute.xlu1 %1134 }
 0x296   :  { %v1137_v12 = vmul.f32 %v1135_v11, %v1120_v3 }
 0x298   :  { %1139 = vrot.lane.b32.xlu1 %v1137_v12, %s5803_s21  ;;  %v1633_v12 = vrot.slane %v5938_v37, 4 }
 0x30a   :  { %v1140_v13 = vpop.permute.xlu1 %1139 }
 0x30b   :  { %v1144_v15 = vsel %vm650_vm6, %v1140_v13, 0 }
 0x30c   :  { %v1213_v16 = vand.u32 4294901760, %v1144_v15 }
 0x30e   :  { %v1214_v17 = vsub.f32 %v1144_v15, %v1213_v16  ;;  %5345 = vmatmul.mubr.f32.vlgmr.msra.gmra.mxu1 %v1213_v16 }
 0x30f   :  { %5355 = vmatpush3.msra.mxu1 %v5849_v40  ;;  %5358 = vmatprep.mubr.msk.f32.mxu1 %vm5799_vm2, %v5798_v14 }
 0x310   :  { %v1215_v18 = vand.u32 4294901760, %v1214_v17  ;;  %5356 = vmatprep.subr.mxu1 %v5798_v14 }
 0x311   :  { %5357 = vmatpush3.msra.mxu1 %v5851_v45 }
 0x312   :  { %v1216_v19 = vsub.f32 %v1214_v17, %v1215_v18  ;;  %5359 = vmatmul.mubr.f32.vlgmr.msra.gmra.mxu1 %v1215_v18  ;;  %5368 = vmatprep.subr.mxu1 %v5798_v14 }
 0x313   :  { %5369 = vmatpush3.msra.mxu1 %v5849_v40  ;;  %5372 = vmatprep.mubr.msk.f32.mxu1 %vm5799_vm2, %v5798_v14 }
 0x314   :  { %v1217_v20 = vand.u32 4294901760, %v1216_v19  ;;  %5370 = vmatprep.subr.mxu1 %v5798_v14 }
 0x315   :  { %5371 = vmatpush3.msra.mxu1 %v5851_v45 }
 0x316   :  { %5338 = vmatmul.mubr.f32.vlgmr.msra.gmra.mxu0 %v1217_v20  ;;  %5373 = vmatmul.mubr.f32.vlgmr.msra.gmra.mxu1 %v1213_v16 }
 0x317   :  { %5348 = vmatpush3.msra.mxu0 %v5855_v51  ;;  %5351 = vmatprep.mubr.msk.f32.mxu0 %vm5799_vm2, %v5798_v14 }
 0x318   :  { %5349 = vmatprep.subr.mxu0 %v5798_v14  ;;  %5382 = vmatprep.subr.mxu1 %v5798_v14 }
 0x319   :  { %5350 = vmatpush3.msra.mxu0 %v5858_v54  ;;  %5383 = vmatpush3.msra.mxu1 %v5874_v7 }
 0x31a   :  { %5361 = vmatprep.subr.mxu0 %v5798_v14  ;;  %5352 = vmatmul.mubr.f32.vlgmr.msra.gmra.mxu0 %v1214_v17 }
 0x31b   :  { %5362 = vmatpush3.msra.mxu0 %v5861_v58  ;;  %5365 = vmatprep.mubr.msk.f32.mxu0 %vm5799_vm2, %v5798_v14 }
 0x31c   :  { %5363 = vmatprep.subr.mxu0 %v5798_v14  ;;  %5384 = vmatprep.subr.mxu1 %v5798_v14 }
 0x31d   :  { %5364 = vmatpush3.msra.mxu0 %v5864_v61  ;;  %5385 = vmatpush3.msra.mxu1 %v5876_v8 }
 0x31e   :  { %5366 = vmatmul.mubr.f32.vlgmr.msra.gmra.mxu0 %v1213_v16  ;;  %5386 = vmatprep.mubr.msk.f32.mxu1 %vm5799_vm2, %v5798_v14 }
 0x31f   :  { %5396 = vmatprep.subr.mxu1 %v5798_v14  ;;  %5375 = vmatprep.subr.mxu0 %v5798_v14 }
 0x320   :  { %5376 = vmatpush3.msra.mxu0 %v5849_v40  ;;  %5379 = vmatprep.mubr.msk.f32.mxu0 %vm5799_vm2, %v5798_v14 }
 0x321   :  { %5377 = vmatprep.subr.mxu0 %v5798_v14 }
 0x322   :  { %5378 = vmatpush3.msra.mxu0 %v5851_v45 }
 0x323   :  { %5389 = vmatprep.subr.mxu0 %v5798_v14 }
 0x3ce   :  { %v1300_v21 = vpop.f32.mrf.mxu1 }
 0x3d0   :  { %v5346_v22 = vpop.f32.mrf.mxu1 }
 0x3d2   :  { %v1451_v23 = vpop.f32.mrf.mxu1 }
 0x3d4   :  { %v5360_v24 = vpop.f32.mrf.mxu1 }
 0x3d6   :  { %v1219_v26 = vpop.f32.mrf.mxu0  ;;  %v1601_v27 = vpop.f32.mrf.mxu1 }
 0x3d7   :  { %v1220_v28 = vadd.f32 %v1219_v26, %v1142_v25 }
 0x3d8   :  { %v5339_v29 = vpop.f32.mrf.mxu0  ;;  %v5374_v30 = vpop.f32.mrf.mxu1 }
 0x3d9   :  { %v1301_v31 = vadd.f32 %v1300_v21, %v1220_v28 }
 0x3da   :  { %v1376_v32 = vpop.f32.mrf.mxu0 }
 0x3db   :  { %v1377_v33 = vadd.f32 %v1376_v32, %v1301_v31 }
 0x3dc   :  { %v5353_v35 = vpop.f32.mrf.mxu0 }
 0x3dd   :  { %v1452_v36 = vadd.f32 %v1451_v23, %v1377_v33 }
 0x3de   :  { %v1528_v38 = vpop.f32.mrf.mxu0 }
 0x3df   :  { %v1529_v39 = vadd.f32 %v1528_v38, %v1452_v36 }
 0x3e0   :  { %v5367_v41 = vpop.f32.mrf.mxu0 }
 0x3e1   :  { %v1602_v42 = vadd.f32 %v1601_v27, %v1529_v39 }
 0x3e3   :  { %v5073_v43 = vmul.f32 -1.442695, %v1602_v42 }
 0x3e5   :  { %5689 = vpow2.f32 %v5073_v43 }
 0x3e6   :  { %5691 = vtanh.f32 %v1602_v42 }
 0x3f2   :  { %v5690_v44 = vpop.eup %5689 }
 0x3f3   :  { %v1608_v46 = vadd.f32 1.0, %v5690_v44  ;;  %v5692_v47 = vpop.eup %5691 }
 0x3f5   :  { %5693 = vrcp.f32 %v1608_v46 }
 0x402   :  { %v5694_v48 = vpop.eup %5693 }
 0x403   :  { %v1612_v49 = vsel %vm5942_vm5, %v5692_v47, %v5694_v48 }
 0x404   :  { %1615 = vrot.lane.b32.xlu0 %v1612_v49, %s5800_s0  ;;  %v1613_v53 = vmul.f32 %v1612_v49, %v5950_v9 }
 0x476   :  { %v1616_v50 = vpop.permute.xlu0 %1615 }
 0x477   :  { %v1618_v52 = vmul.f32 %v1616_v50, %v1612_v49 }
 0x479   :  { %1620 = vrot.lane.b32.xlu1 %v1618_v52, %s5801_s19 }
 0x4eb   :  { %v1621_v55 = vpop.permute.xlu1 %1620 }
 0x4ec   :  { %v5998_v56 = vadd.f32 %v1621_v55, %v1613_v53 }
 0x4ee   :  { %5695 = vtanh.f32 %v5998_v56 }
 0x4fb   :  { %v5696_v57 = vpop.eup %5695 }
 0x4fc   :  { %1626 = vrot.lane.b32.xlu0 %v5696_v57, %s5802_s20 }
 0x56e   :  { %v1627_v59 = vpop.permute.xlu0 %1626 }
 0x56f   :  { %v1629_v60 = vmul.f32 %v1627_v59, %v1612_v49 }
 0x571   :  { %1631 = vrot.lane.b32.xlu1 %v1629_v60, %s5803_s21  ;;  %v2124_v60 = vrot.slane %v5938_v37, 6 }
 0x5e3   :  { %v1632_v62 = vpop.permute.xlu1 %1631 }
 0x5e4   :  { %v1635_v1 = vsel %vm650_vm6, %v1632_v62, 0 }
 0x5e5   :  { %v1704_v2 = vand.u32 4294901760, %v1635_v1 }
 0x5e7   :  { %v1705_v3 = vsub.f32 %v1635_v1, %v1704_v2  ;;  %5387 = vmatmul.mubr.f32.vlgmr.msra.gmra.mxu1 %v1704_v2 }
 0x5e8   :  { %5397 = vmatpush3.msra.mxu1 %v5849_v40  ;;  %5400 = vmatprep.mubr.msk.f32.mxu1 %vm5799_vm2, %v5798_v14 }
 0x5e9   :  { %v1706_v4 = vand.u32 4294901760, %v1705_v3  ;;  %5398 = vmatprep.subr.mxu1 %v5798_v14 }
 0x5ea   :  { %5399 = vmatpush3.msra.mxu1 %v5851_v45 }
 0x5eb   :  { %v1707_v5 = vsub.f32 %v1705_v3, %v1706_v4  ;;  %5401 = vmatmul.mubr.f32.vlgmr.msra.gmra.mxu1 %v1706_v4  ;;  %5410 = vmatprep.subr.mxu1 %v5798_v14 }
 0x5ec   :  { %5411 = vmatpush3.msra.mxu1 %v5849_v40  ;;  %5414 = vmatprep.mubr.msk.f32.mxu1 %vm5799_vm2, %v5798_v14 }
 0x5ed   :  { %v1708_v0 = vand.u32 4294901760, %v1707_v5  ;;  %5412 = vmatprep.subr.mxu1 %v5798_v14 }
 0x5ee   :  { %5413 = vmatpush3.msra.mxu1 %v5851_v45 }
 0x5ef   :  { %5380 = vmatmul.mubr.f32.vlgmr.msra.gmra.mxu0 %v1708_v0  ;;  %5415 = vmatmul.mubr.f32.vlgmr.msra.gmra.mxu1 %v1704_v2 }
 0x5f0   :  { %5390 = vmatpush3.msra.mxu0 %v5855_v51  ;;  %5393 = vmatprep.mubr.msk.f32.mxu0 %vm5799_vm2, %v5798_v14 }
 0x5f1   :  { %5391 = vmatprep.subr.mxu0 %v5798_v14  ;;  %5424 = vmatprep.subr.mxu1 %v5798_v14 }
 0x5f2   :  { %5392 = vmatpush3.msra.mxu0 %v5858_v54  ;;  %5425 = vmatpush3.msra.mxu1 %v5874_v7 }
 0x5f3   :  { %5403 = vmatprep.subr.mxu0 %v5798_v14  ;;  %5394 = vmatmul.mubr.f32.vlgmr.msra.gmra.mxu0 %v1705_v3 }
 0x5f4   :  { %5404 = vmatpush3.msra.mxu0 %v5861_v58  ;;  %5407 = vmatprep.mubr.msk.f32.mxu0 %vm5799_vm2, %v5798_v14 }
 0x5f5   :  { %5405 = vmatprep.subr.mxu0 %v5798_v14  ;;  %5426 = vmatprep.subr.mxu1 %v5798_v14 }
 0x5f6   :  { %5406 = vmatpush3.msra.mxu0 %v5864_v61  ;;  %5427 = vmatpush3.msra.mxu1 %v5876_v8 }
 0x5f7   :  { %5408 = vmatmul.mubr.f32.vlgmr.msra.gmra.mxu0 %v1704_v2  ;;  %5428 = vmatprep.mubr.msk.f32.mxu1 %vm5799_vm2, %v5798_v14 }
 0x5f8   :  { %5438 = vmatprep.subr.mxu1 %v5798_v14  ;;  %5417 = vmatprep.subr.mxu0 %v5798_v14 }
 0x5f9   :  { %5418 = vmatpush3.msra.mxu0 %v5849_v40  ;;  %5421 = vmatprep.mubr.msk.f32.mxu0 %vm5799_vm2, %v5798_v14 }
 0x5fa   :  { %5419 = vmatprep.subr.mxu0 %v5798_v14 }
 0x5fb   :  { %5420 = vmatpush3.msra.mxu0 %v5851_v45 }
 0x5fc   :  { %5431 = vmatprep.subr.mxu0 %v5798_v14 }
 0x6a7   :  { %v1791_v6 = vpop.f32.mrf.mxu1 }
 0x6a9   :  { %v5388_v9 = vpop.f32.mrf.mxu1 }
 0x6ab   :  { %v1942_v10 = vpop.f32.mrf.mxu1 }
 0x6ad   :  { %v5402_v11 = vpop.f32.mrf.mxu1 }
 0x6af   :  { %v1710_v13 = vpop.f32.mrf.mxu0  ;;  %v2092_v15 = vpop.f32.mrf.mxu1 }
 0x6b0   :  { %v1711_v16 = vadd.f32 %v1710_v13, %v1633_v12 }
 0x6b1   :  { %v5381_v17 = vpop.f32.mrf.mxu0  ;;  %v5416_v18 = vpop.f32.mrf.mxu1 }
 0x6b2   :  { %v1792_v19 = vadd.f32 %v1791_v6, %v1711_v16 }
 0x6b3   :  { %v1867_v20 = vpop.f32.mrf.mxu0 }
 0x6b4   :  { %v1868_v21 = vadd.f32 %v1867_v20, %v1792_v19 }
 0x6b5   :  { %v5395_v22 = vpop.f32.mrf.mxu0 }
 0x6b6   :  { %v1943_v23 = vadd.f32 %v1942_v10, %v1868_v21 }
 0x6b7   :  { %v2019_v24 = vpop.f32.mrf.mxu0 }
 0x6b8   :  { %v2020_v25 = vadd.f32 %v2019_v24, %v1943_v23 }
 0x6b9   :  { %v5409_v26 = vpop.f32.mrf.mxu0 }
 0x6ba   :  { %v2093_v27 = vadd.f32 %v2092_v15, %v2020_v25 }
 0x6bc   :  { %v5074_v28 = vmul.f32 -1.442695, %v2093_v27 }
 0x6be   :  { %5697 = vpow2.f32 %v5074_v28 }
 0x6bf   :  { %5699 = vtanh.f32 %v2093_v27 }
 0x6cb   :  { %v5698_v29 = vpop.eup %5697 }
 0x6cc   :  { %v2099_v30 = vadd.f32 1.0, %v5698_v29  ;;  %v5700_v31 = vpop.eup %5699 }
 0x6ce   :  { %5701 = vrcp.f32 %v2099_v30 }
 0x6db   :  { %v5702_v32 = vpop.eup %5701 }
 0x6dc   :  { %v2103_v33 = vsel %vm5942_vm5, %v5700_v31, %v5702_v32 }
 0x6dd   :  { %2106 = vrot.lane.b32.xlu0 %v2103_v33, %s5800_s0  ;;  %v2104_v38 = vmul.f32 %v2103_v33, %v5998_v56 }
 0x74f   :  { %v2107_v35 = vpop.permute.xlu0 %2106 }
 0x750   :  { %v2109_v36 = vmul.f32 %v2107_v35, %v2103_v33 }
 0x752   :  { %2111 = vrot.lane.b32.xlu1 %v2109_v36, %s5801_s19 }
 0x7c4   :  { %v2112_v39 = vpop.permute.xlu1 %2111 }
 0x7c5   :  { %v6046_v41 = vadd.f32 %v2112_v39, %v2104_v38 }
 0x7c7   :  { %5703 = vtanh.f32 %v6046_v41 }
 0x7d4   :  { %v5704_v42 = vpop.eup %5703 }
 0x7d5   :  { %2117 = vrot.lane.b32.xlu0 %v5704_v42, %s5802_s20 }
 0x847   :  { %v2118_v43 = vpop.permute.xlu0 %2117 }
 0x848   :  { %v2120_v44 = vmul.f32 %v2118_v43, %v2103_v33 }
 0x84a   :  { %2122 = vrot.lane.b32.xlu1 %v2120_v44, %s5803_s21 }
 0x8bc   :  { %v2123_v46 = vpop.permute.xlu1 %2122 }
 0x8bd   :  { %v2126_v47 = vsel %vm650_vm6, %v2123_v46, 0 }
 0x8be   :  { %v2195_v48 = vand.u32 4294901760, %v2126_v47 }
 0x8c0   :  { %v2196_v49 = vsub.f32 %v2126_v47, %v2195_v48  ;;  %5429 = vmatmul.mubr.f32.vlgmr.msra.gmra.mxu1 %v2195_v48 }
 0x8c1   :  { %5439 = vmatpush3.msra.mxu1 %v5849_v40  ;;  %5442 = vmatprep.mubr.msk.f32.mxu1 %vm5799_vm2, %v5798_v14 }
 0x8c2   :  { %v2197_v50 = vand.u32 4294901760, %v2196_v49  ;;  %5440 = vmatprep.subr.mxu1 %v5798_v14 }
 0x8c3   :  { %5441 = vmatpush3.msra.mxu1 %v5851_v45 }
 0x8c4   :  { %v2198_v52 = vsub.f32 %v2196_v49, %v2197_v50  ;;  %5443 = vmatmul.mubr.f32.vlgmr.msra.gmra.mxu1 %v2197_v50  ;;  %5452 = vmatprep.subr.mxu1 %v5798_v14 }
 0x8c5   :  { %5453 = vmatpush3.msra.mxu1 %v5849_v40  ;;  %5456 = vmatprep.mubr.msk.f32.mxu1 %vm5799_vm2, %v5798_v14 }
 0x8c6   :  { %v2199_v53 = vand.u32 4294901760, %v2198_v52  ;;  %5454 = vmatprep.subr.mxu1 %v5798_v14 }
 0x8c7   :  { %5455 = vmatpush3.msra.mxu1 %v5851_v45 }
 0x8c8   :  { %5422 = vmatmul.mubr.f32.vlgmr.msra.gmra.mxu0 %v2199_v53  ;;  %5457 = vmatmul.mubr.f32.vlgmr.msra.gmra.mxu1 %v2195_v48 }
 0x8c9   :  { %5432 = vmatpush3.msra.mxu0 %v5855_v51  ;;  %5435 = vmatprep.mubr.msk.f32.mxu0 %vm5799_vm2, %v5798_v14 }
 0x8ca   :  { %5433 = vmatprep.subr.mxu0 %v5798_v14  ;;  %5466 = vmatprep.subr.mxu1 %v5798_v14 }
 0x8cb   :  { %5434 = vmatpush3.msra.mxu0 %v5858_v54  ;;  %5467 = vmatpush3.msra.mxu1 %v5874_v7 }
 0x8cc   :  { %5445 = vmatprep.subr.mxu0 %v5798_v14  ;;  %5436 = vmatmul.mubr.f32.vlgmr.msra.gmra.mxu0 %v2196_v49 }
 0x8cd   :  { %5446 = vmatpush3.msra.mxu0 %v5861_v58  ;;  %5449 = vmatprep.mubr.msk.f32.mxu0 %vm5799_vm2, %v5798_v14 }
 0x8ce   :  { %5447 = vmatprep.subr.mxu0 %v5798_v14  ;;  %5468 = vmatprep.subr.mxu1 %v5798_v14 }
 0x8cf   :  { %5448 = vmatpush3.msra.mxu0 %v5864_v61  ;;  %5469 = vmatpush3.msra.mxu1 %v5876_v8 }
 0x8d0   :  { %5450 = vmatmul.mubr.f32.vlgmr.msra.gmra.mxu0 %v2195_v48  ;;  %5470 = vmatprep.mubr.msk.f32.mxu1 %vm5799_vm2, %v5798_v14 }
 0x8d1   :  { %5480 = vmatprep.subr.mxu1 %v5798_v14  ;;  %5459 = vmatprep.subr.mxu0 %v5798_v14 }
 0x8d2   :  { %5460 = vmatpush3.msra.mxu0 %v5849_v40  ;;  %5463 = vmatprep.mubr.msk.f32.mxu0 %vm5799_vm2, %v5798_v14 }
 0x8d3   :  { %5461 = vmatprep.subr.mxu0 %v5798_v14 }
 0x8d4   :  { %5462 = vmatpush3.msra.mxu0 %v5851_v45 }
 0x8d5   :  { %5473 = vmatprep.subr.mxu0 %v5798_v14 }
 0x980   :  { %v2282_v55 = vpop.f32.mrf.mxu1 }
 0x982   :  { %v5430_v56 = vpop.f32.mrf.mxu1 }
 0x984   :  { %v2433_v57 = vpop.f32.mrf.mxu1 }
 0x986   :  { %v5444_v59 = vpop.f32.mrf.mxu1 }
 0x988   :  { %v2201_v62 = vpop.f32.mrf.mxu0  ;;  %v2583_v1 = vpop.f32.mrf.mxu1 }
 0x989   :  { %v2202_v2 = vadd.f32 %v2201_v62, %v2124_v60 }
 0x98a   :  { %v5423_v3 = vpop.f32.mrf.mxu0  ;;  %v5458_v4 = vpop.f32.mrf.mxu1 }
 0x98b   :  { %v2283_v5 = vadd.f32 %v2282_v55, %v2202_v2 }
 0x98c   :  { %v2358_v0 = vpop.f32.mrf.mxu0 }
 0x98d   :  { %v2359_v6 = vadd.f32 %v2358_v0, %v2283_v5 }
 0x98e   :  { %v5437_v9 = vpop.f32.mrf.mxu0 }
 0x98f   :  { %v2434_v10 = vadd.f32 %v2433_v57, %v2359_v6 }
 0x990   :  { %v2510_v11 = vpop.f32.mrf.mxu0 }
 0x991   :  { %v2511_v12 = vadd.f32 %v2510_v11, %v2434_v10 }
 0x992   :  { %v5451_v13 = vpop.f32.mrf.mxu0 }
 0x993   :  { %v2584_v15 = vadd.f32 %v2583_v1, %v2511_v12 }
 0x995   :  { %v5075_v16 = vmul.f32 -1.442695, %v2584_v15 }
 0x997   :  { %5705 = vpow2.f32 %v5075_v16 }
 0x998   :  { %5707 = vtanh.f32 %v2584_v15 }
 0x9a4   :  { %v5706_v17 = vpop.eup %5705 }
 0x9a5   :  { %v2590_v18 = vadd.f32 1.0, %v5706_v17  ;;  %v5708_v37 = vpop.eup %5707 }
 0x9a7   :  { %5709 = vrcp.f32 %v2590_v18 }
 0x9b4   :  { %v5710_v19 = vpop.eup %5709 }
 0x9b5   :  { %v2594_v20 = vsel %vm5942_vm5, %v5708_v37, %v5710_v19 }
 0x9b6   :  { %2597 = vrot.lane.b32.xlu0 %v2594_v20, %s5800_s0  ;;  %v2595_v23 = vmul.f32 %v2594_v20, %v6046_v41 }
 0xa28   :  { %v2598_v21 = vpop.permute.xlu0 %2597 }
 0xa29   :  { %v2600_v22 = vmul.f32 %v2598_v21, %v2594_v20 }
 0xa2b   :  { %2602 = vrot.lane.b32.xlu1 %v2600_v22, %s5801_s19 }
 0xa9d   :  { %v2603_v24 = vpop.permute.xlu1 %2602 }
 0xa9e   :  { %v6094_v25 = vadd.f32 %v2603_v24, %v2595_v23 }
 0xaa0   :  { %5711 = vtanh.f32 %v6094_v25 }
 0xaad   :  { %v5712_v26 = vpop.eup %5711 }
 0xaae   :  { %2608 = vrot.lane.b32.xlu0 %v5712_v26, %s5802_s20  ;;  %v3105_v26 = vrot.slane %v5936_v34, 2 }
 0xb20   :  { %v2609_v27 = vpop.permute.xlu0 %2608 }
 0xb21   :  { %v2611_v28 = vmul.f32 %v2609_v27, %v2594_v20 }
 0xb23   :  { %2613 = vrot.lane.b32.xlu1 %v2611_v28, %s5803_s21 }
 0xb95   :  { %v2614_v29 = vpop.permute.xlu1 %2613 }
 0xb96   :  { %v2615_v30 = vsel %vm650_vm6, %v2614_v29, 0 }
 0xb97   :  { %v2684_v31 = vand.u32 4294901760, %v2615_v30 }
 0xb99   :  { %v2685_v32 = vsub.f32 %v2615_v30, %v2684_v31  ;;  %5471 = vmatmul.mubr.f32.vlgmr.msra.gmra.mxu1 %v2684_v31 }
 0xb9a   :  { %5481 = vmatpush3.msra.mxu1 %v5849_v40  ;;  %5484 = vmatprep.mubr.msk.f32.mxu1 %vm5799_vm2, %v5798_v14 }
 0xb9b   :  { %v2686_v33 = vand.u32 4294901760, %v2685_v32  ;;  %5482 = vmatprep.subr.mxu1 %v5798_v14 }
 0xb9c   :  { %5483 = vmatpush3.msra.mxu1 %v5851_v45 }
 0xb9d   :  { %v2687_v35 = vsub.f32 %v2685_v32, %v2686_v33  ;;  %5485 = vmatmul.mubr.f32.vlgmr.msra.gmra.mxu1 %v2686_v33  ;;  %5494 = vmatprep.subr.mxu1 %v5798_v14 }
 0xb9e   :  { %5495 = vmatpush3.msra.mxu1 %v5849_v40  ;;  %5498 = vmatprep.mubr.msk.f32.mxu1 %vm5799_vm2, %v5798_v14 }
 0xb9f   :  { %v2688_v36 = vand.u32 4294901760, %v2687_v35  ;;  %5496 = vmatprep.subr.mxu1 %v5798_v14 }
 0xba0   :  { %5497 = vmatpush3.msra.mxu1 %v5851_v45 }
 0xba1   :  { %5464 = vmatmul.mubr.f32.vlgmr.msra.gmra.mxu0 %v2688_v36  ;;  %5499 = vmatmul.mubr.f32.vlgmr.msra.gmra.mxu1 %v2684_v31 }
 0xba2   :  { %5474 = vmatpush3.msra.mxu0 %v5855_v51  ;;  %5477 = vmatprep.mubr.msk.f32.mxu0 %vm5799_vm2, %v5798_v14 }
 0xba3   :  { %5475 = vmatprep.subr.mxu0 %v5798_v14  ;;  %5508 = vmatprep.subr.mxu1 %v5798_v14 }
 0xba4   :  { %5476 = vmatpush3.msra.mxu0 %v5858_v54  ;;  %5509 = vmatpush3.msra.mxu1 %v5874_v7 }
 0xba5   :  { %5487 = vmatprep.subr.mxu0 %v5798_v14  ;;  %5478 = vmatmul.mubr.f32.vlgmr.msra.gmra.mxu0 %v2685_v32 }
 0xba6   :  { %5488 = vmatpush3.msra.mxu0 %v5861_v58  ;;  %5491 = vmatprep.mubr.msk.f32.mxu0 %vm5799_vm2, %v5798_v14 }
 0xba7   :  { %5489 = vmatprep.subr.mxu0 %v5798_v14  ;;  %5510 = vmatprep.subr.mxu1 %v5798_v14 }
 0xba8   :  { %5490 = vmatpush3.msra.mxu0 %v5864_v61  ;;  %5511 = vmatpush3.msra.mxu1 %v5876_v8 }
 0xba9   :  { %5492 = vmatmul.mubr.f32.vlgmr.msra.gmra.mxu0 %v2684_v31  ;;  %5512 = vmatprep.mubr.msk.f32.mxu1 %vm5799_vm2, %v5798_v14 }
 0xbaa   :  { %5522 = vmatprep.subr.mxu1 %v5798_v14  ;;  %5501 = vmatprep.subr.mxu0 %v5798_v14 }
 0xbab   :  { %5502 = vmatpush3.msra.mxu0 %v5849_v40  ;;  %5505 = vmatprep.mubr.msk.f32.mxu0 %vm5799_vm2, %v5798_v14 }
 0xbac   :  { %5503 = vmatprep.subr.mxu0 %v5798_v14 }
 0xbad   :  { %5504 = vmatpush3.msra.mxu0 %v5851_v45 }
 0xbae   :  { %5515 = vmatprep.subr.mxu0 %v5798_v14 }
 0xc59   :  { %v2771_v38 = vpop.f32.mrf.mxu1 }
 0xc5b   :  { %v5472_v39 = vpop.f32.mrf.mxu1 }
 0xc5d   :  { %v2922_v41 = vpop.f32.mrf.mxu1 }
 0xc5f   :  { %v5486_v42 = vpop.f32.mrf.mxu1 }
 0xc61   :  { %v2690_v43 = vpop.f32.mrf.mxu0  ;;  %v3072_v44 = vpop.f32.mrf.mxu1 }
 0xc62   :  { %v2691_v46 = vadd.f32 %v2690_v43, %v5936_v34 }
 0xc63   :  { %v5465_v47 = vpop.f32.mrf.mxu0  ;;  %v5500_v48 = vpop.f32.mrf.mxu1 }
 0xc64   :  { %v2772_v49 = vadd.f32 %v2771_v38, %v2691_v46 }
 0xc65   :  { %v2847_v50 = vpop.f32.mrf.mxu0 }
 0xc66   :  { %v2848_v52 = vadd.f32 %v2847_v50, %v2772_v49 }
 0xc67   :  { %v5479_v53 = vpop.f32.mrf.mxu0 }
 0xc68   :  { %v2923_v55 = vadd.f32 %v2922_v41, %v2848_v52 }
 0xc69   :  { %v2999_v56 = vpop.f32.mrf.mxu0 }
 0xc6a   :  { %v3000_v57 = vadd.f32 %v2999_v56, %v2923_v55 }
 0xc6b   :  { %v5493_v59 = vpop.f32.mrf.mxu0 }
 0xc6c   :  { %v3073_v60 = vadd.f32 %v3072_v44, %v3000_v57 }
 0xc6e   :  { %v5076_v62 = vmul.f32 -1.442695, %v3073_v60 }
 0xc70   :  { %5713 = vpow2.f32 %v5076_v62 }
 0xc71   :  { %5715 = vtanh.f32 %v3073_v60 }
 0xc7d   :  { %v5714_v1 = vpop.eup %5713 }
 0xc7e   :  { %v3079_v2 = vadd.f32 1.0, %v5714_v1  ;;  %v5716_v3 = vpop.eup %5715 }
 0xc80   :  { %5717 = vrcp.f32 %v3079_v2 }
 0xc8d   :  { %v5718_v4 = vpop.eup %5717 }
 0xc8e   :  { %v3083_v5 = vsel %vm5942_vm5, %v5716_v3, %v5718_v4 }
 0xc8f   :  { %3086 = vrot.lane.b32.xlu0 %v3083_v5, %s5800_s0  ;;  %v3084_v9 = vmul.f32 %v3083_v5, %v6094_v25 }
 0xd01   :  { %v3087_v0 = vpop.permute.xlu0 %3086 }
 0xd02   :  { %v3089_v6 = vmul.f32 %v3087_v0, %v3083_v5 }
 0xd04   :  { %3091 = vrot.lane.b32.xlu1 %v3089_v6, %s5801_s19 }
 0xd76   :  { %v3092_v10 = vpop.permute.xlu1 %3091 }
 0xd77   :  { %v6142_v11 = vadd.f32 %v3092_v10, %v3084_v9 }
 0xd79   :  { %5719 = vtanh.f32 %v6142_v11 }
 0xd86   :  { %v5720_v12 = vpop.eup %5719 }
 0xd87   :  { %3097 = vrot.lane.b32.xlu0 %v5720_v12, %s5802_s20 }
 0xdf9   :  { %v3098_v13 = vpop.permute.xlu0 %3097 }
 0xdfa   :  { %v3100_v15 = vmul.f32 %v3098_v13, %v3083_v5 }
 0xdfc   :  { %3102 = vrot.lane.b32.xlu1 %v3100_v15, %s5803_s21 }
 0xe6e   :  { %v3103_v16 = vpop.permute.xlu1 %3102 }
 0xe6f   :  { %v3107_v17 = vsel %vm650_vm6, %v3103_v16, 0 }
 0xe70   :  { %v3176_v18 = vand.u32 4294901760, %v3107_v17 }
 0xe72   :  { %v3177_v37 = vsub.f32 %v3107_v17, %v3176_v18  ;;  %5513 = vmatmul.mubr.f32.vlgmr.msra.gmra.mxu1 %v3176_v18 }
 0xe73   :  { %5523 = vmatpush3.msra.mxu1 %v5849_v40  ;;  %5526 = vmatprep.mubr.msk.f32.mxu1 %vm5799_vm2, %v5798_v14 }
 0xe74   :  { %v3178_v19 = vand.u32 4294901760, %v3177_v37  ;;  %5524 = vmatprep.subr.mxu1 %v5798_v14 }
 0xe75   :  { %5525 = vmatpush3.msra.mxu1 %v5851_v45 }
 0xe76   :  { %v3179_v20 = vsub.f32 %v3177_v37, %v3178_v19  ;;  %5527 = vmatmul.mubr.f32.vlgmr.msra.gmra.mxu1 %v3178_v19  ;;  %5536 = vmatprep.subr.mxu1 %v5798_v14 }
 0xe77   :  { %5537 = vmatpush3.msra.mxu1 %v5849_v40  ;;  %5540 = vmatprep.mubr.msk.f32.mxu1 %vm5799_vm2, %v5798_v14 }
 0xe78   :  { %v3180_v21 = vand.u32 4294901760, %v3179_v20  ;;  %5538 = vmatprep.subr.mxu1 %v5798_v14 }
 0xe79   :  { %5539 = vmatpush3.msra.mxu1 %v5851_v45 }
 0xe7a   :  { %5506 = vmatmul.mubr.f32.vlgmr.msra.gmra.mxu0 %v3180_v21  ;;  %5541 = vmatmul.mubr.f32.vlgmr.msra.gmra.mxu1 %v3176_v18 }
 0xe7b   :  { %5516 = vmatpush3.msra.mxu0 %v5855_v51  ;;  %5519 = vmatprep.mubr.msk.f32.mxu0 %vm5799_vm2, %v5798_v14 }
 0xe7c   :  { %5517 = vmatprep.subr.mxu0 %v5798_v14  ;;  %5550 = vmatprep.subr.mxu1 %v5798_v14 }
 0xe7d   :  { %5518 = vmatpush3.msra.mxu0 %v5858_v54  ;;  %5551 = vmatpush3.msra.mxu1 %v5874_v7 }
 0xe7e   :  { %5529 = vmatprep.subr.mxu0 %v5798_v14  ;;  %5520 = vmatmul.mubr.f32.vlgmr.msra.gmra.mxu0 %v3177_v37 }
 0xe7f   :  { %5530 = vmatpush3.msra.mxu0 %v5861_v58  ;;  %5533 = vmatprep.mubr.msk.f32.mxu0 %vm5799_vm2, %v5798_v14 }
 0xe80   :  { %5531 = vmatprep.subr.mxu0 %v5798_v14  ;;  %5552 = vmatprep.subr.mxu1 %v5798_v14 }
 0xe81   :  { %5532 = vmatpush3.msra.mxu0 %v5864_v61  ;;  %5553 = vmatpush3.msra.mxu1 %v5876_v8 }
 0xe82   :  { %5534 = vmatmul.mubr.f32.vlgmr.msra.gmra.mxu0 %v3176_v18  ;;  %5554 = vmatprep.mubr.msk.f32.mxu1 %vm5799_vm2, %v5798_v14 }
 0xe83   :  { %5564 = vmatprep.subr.mxu1 %v5798_v14  ;;  %5543 = vmatprep.subr.mxu0 %v5798_v14 }
 0xe84   :  { %5544 = vmatpush3.msra.mxu0 %v5849_v40  ;;  %5547 = vmatprep.mubr.msk.f32.mxu0 %vm5799_vm2, %v5798_v14 }
 0xe85   :  { %5545 = vmatprep.subr.mxu0 %v5798_v14 }
 0xe86   :  { %5546 = vmatpush3.msra.mxu0 %v5851_v45 }
 0xe87   :  { %5557 = vmatprep.subr.mxu0 %v5798_v14 }
 0xf32   :  { %v3263_v22 = vpop.f32.mrf.mxu1 }
 0xf34   :  { %v5514_v23 = vpop.f32.mrf.mxu1 }
 0xf36   :  { %v3414_v24 = vpop.f32.mrf.mxu1 }
 0xf38   :  { %v5528_v25 = vpop.f32.mrf.mxu1 }
 0xf3a   :  { %v3182_v27 = vpop.f32.mrf.mxu0  ;;  %v3564_v28 = vpop.f32.mrf.mxu1 }
 0xf3b   :  { %v3183_v29 = vadd.f32 %v3182_v27, %v3105_v26 }
 0xf3c   :  { %v5507_v30 = vpop.f32.mrf.mxu0  ;;  %v5542_v31 = vpop.f32.mrf.mxu1 }
 0xf3d   :  { %v3264_v32 = vadd.f32 %v3263_v22, %v3183_v29 }
 0xf3e   :  { %v3339_v33 = vpop.f32.mrf.mxu0 }
 0xf3f   :  { %v3340_v35 = vadd.f32 %v3339_v33, %v3264_v32 }
 0xf40   :  { %v5521_v36 = vpop.f32.mrf.mxu0 }
 0xf41   :  { %v3415_v38 = vadd.f32 %v3414_v24, %v3340_v35 }
 0xf42   :  { %v3491_v39 = vpop.f32.mrf.mxu0 }
 0xf43   :  { %v3492_v41 = vadd.f32 %v3491_v39, %v3415_v38 }
 0xf44   :  { %v5535_v42 = vpop.f32.mrf.mxu0 }
 0xf45   :  { %v3565_v43 = vadd.f32 %v3564_v28, %v3492_v41 }
 0xf47   :  { %v5077_v44 = vmul.f32 -1.442695, %v3565_v43 }
 0xf49   :  { %5721 = vpow2.f32 %v5077_v44 }
 0xf4a   :  { %5723 = vtanh.f32 %v3565_v43 }
 0xf56   :  { %v5722_v46 = vpop.eup %5721 }
 0xf57   :  { %v3571_v47 = vadd.f32 1.0, %v5722_v46  ;;  %v5724_v48 = vpop.eup %5723 }
 0xf59   :  { %5725 = vrcp.f32 %v3571_v47 }
 0xf66   :  { %v5726_v49 = vpop.eup %5725 }
 0xf67   :  { %v3575_v50 = vsel %vm5942_vm5, %v5724_v48, %v5726_v49 }
 0xf68   :  { %3578 = vrot.lane.b32.xlu0 %v3575_v50, %s5800_s0  ;;  %v3576_v55 = vmul.f32 %v3575_v50, %v6142_v11  ;;  %v3596_v11 = vrot.slane %v5936_v34, 4 }
 0xfda   :  { %v3579_v52 = vpop.permute.xlu0 %3578 }
 0xfdb   :  { %v3581_v53 = vmul.f32 %v3579_v52, %v3575_v50  ;;  %v4087_v52 = vrot.slane %v5936_v34, 6 }
 0xfdd   :  { %3583 = vrot.lane.b32.xlu1 %v3581_v53, %s5801_s19 }
0x104f   :  { %v3584_v56 = vpop.permute.xlu1 %3583 }
0x1050   :  { %v6190_v57 = vadd.f32 %v3584_v56, %v3576_v55 }
0x1052   :  { %5727 = vtanh.f32 %v6190_v57 }
0x105f   :  { %v5728_v59 = vpop.eup %5727 }
0x1060   :  { %3589 = vrot.lane.b32.xlu0 %v5728_v59, %s5802_s20 }
0x10d2   :  { %v3590_v60 = vpop.permute.xlu0 %3589 }
0x10d3   :  { %v3592_v62 = vmul.f32 %v3590_v60, %v3575_v50 }
0x10d5   :  { %3594 = vrot.lane.b32.xlu1 %v3592_v62, %s5803_s21 }
0x1147   :  { %v3595_v1 = vpop.permute.xlu1 %3594 }
0x1148   :  { %v3598_v2 = vsel %vm650_vm6, %v3595_v1, 0 }
0x1149   :  { %v3667_v3 = vand.u32 4294901760, %v3598_v2 }
0x114b   :  { %v3668_v4 = vsub.f32 %v3598_v2, %v3667_v3  ;;  %5555 = vmatmul.mubr.f32.vlgmr.msra.gmra.mxu1 %v3667_v3 }
0x114c   :  { %5565 = vmatpush3.msra.mxu1 %v5849_v40  ;;  %5568 = vmatprep.mubr.msk.f32.mxu1 %vm5799_vm2, %v5798_v14 }
0x114d   :  { %v3669_v5 = vand.u32 4294901760, %v3668_v4  ;;  %5566 = vmatprep.subr.mxu1 %v5798_v14 }
0x114e   :  { %5567 = vmatpush3.msra.mxu1 %v5851_v45 }
0x114f   :  { %v3670_v0 = vsub.f32 %v3668_v4, %v3669_v5  ;;  %5569 = vmatmul.mubr.f32.vlgmr.msra.gmra.mxu1 %v3669_v5  ;;  %5578 = vmatprep.subr.mxu1 %v5798_v14 }
0x1150   :  { %5579 = vmatpush3.msra.mxu1 %v5849_v40  ;;  %5582 = vmatprep.mubr.msk.f32.mxu1 %vm5799_vm2, %v5798_v14 }
0x1151   :  { %v3671_v6 = vand.u32 4294901760, %v3670_v0  ;;  %5580 = vmatprep.subr.mxu1 %v5798_v14 }
0x1152   :  { %5581 = vmatpush3.msra.mxu1 %v5851_v45 }
0x1153   :  { %5548 = vmatmul.mubr.f32.vlgmr.msra.gmra.mxu0 %v3671_v6  ;;  %5583 = vmatmul.mubr.f32.vlgmr.msra.gmra.mxu1 %v3667_v3 }
0x1154   :  { %5558 = vmatpush3.msra.mxu0 %v5855_v51  ;;  %5561 = vmatprep.mubr.msk.f32.mxu0 %vm5799_vm2, %v5798_v14 }
0x1155   :  { %5559 = vmatprep.subr.mxu0 %v5798_v14  ;;  %5592 = vmatprep.subr.mxu1 %v5798_v14 }
0x1156   :  { %5560 = vmatpush3.msra.mxu0 %v5858_v54  ;;  %5593 = vmatpush3.msra.mxu1 %v5874_v7 }
0x1157   :  { %5571 = vmatprep.subr.mxu0 %v5798_v14  ;;  %5562 = vmatmul.mubr.f32.vlgmr.msra.gmra.mxu0 %v3668_v4 }
0x1158   :  { %5572 = vmatpush3.msra.mxu0 %v5861_v58  ;;  %5575 = vmatprep.mubr.msk.f32.mxu0 %vm5799_vm2, %v5798_v14 }
0x1159   :  { %5573 = vmatprep.subr.mxu0 %v5798_v14  ;;  %5594 = vmatprep.subr.mxu1 %v5798_v14 }
0x115a   :  { %5574 = vmatpush3.msra.mxu0 %v5864_v61  ;;  %5595 = vmatpush3.msra.mxu1 %v5876_v8 }
0x115b   :  { %5576 = vmatmul.mubr.f32.vlgmr.msra.gmra.mxu0 %v3667_v3  ;;  %5596 = vmatprep.mubr.msk.f32.mxu1 %vm5799_vm2, %v5798_v14 }
0x115c   :  { %5606 = vmatprep.subr.mxu1 %v5798_v14  ;;  %5585 = vmatprep.subr.mxu0 %v5798_v14 }
0x115d   :  { %5586 = vmatpush3.msra.mxu0 %v5849_v40  ;;  %5589 = vmatprep.mubr.msk.f32.mxu0 %vm5799_vm2, %v5798_v14 }
0x115e   :  { %5587 = vmatprep.subr.mxu0 %v5798_v14 }
0x115f   :  { %5588 = vmatpush3.msra.mxu0 %v5851_v45 }
0x1160   :  { %5599 = vmatprep.subr.mxu0 %v5798_v14 }
0x120b   :  { %v3754_v7 = vpop.f32.mrf.mxu1 }
0x120d   :  { %v5556_v8 = vpop.f32.mrf.mxu1 }
0x120f   :  { %v3905_v9 = vpop.f32.mrf.mxu1 }
0x1211   :  { %v5570_v10 = vpop.f32.mrf.mxu1 }
0x1213   :  { %v3673_v12 = vpop.f32.mrf.mxu0  ;;  %v4055_v13 = vpop.f32.mrf.mxu1 }
0x1214   :  { %v3674_v15 = vadd.f32 %v3673_v12, %v3596_v11 }
0x1215   :  { %v5549_v16 = vpop.f32.mrf.mxu0  ;;  %v5584_v17 = vpop.f32.mrf.mxu1 }
0x1216   :  { %v3755_v18 = vadd.f32 %v3754_v7, %v3674_v15  ;;  %v31_v17 = vld [vmem:[#allocation2 + $0x28] sm:$0xff] }
0x1217   :  { %v3830_v37 = vpop.f32.mrf.mxu0 }
0x1218   :  { %v3831_v19 = vadd.f32 %v3830_v37, %v3755_v18  ;;  %v4613_v18 = vand.u32 4294901760, %v31_v17  ;;  %v30_v37 = vld [vmem:[#allocation2 + $0x20] sm:$0xff] }
0x1219   :  { %v5563_v20 = vpop.f32.mrf.mxu0  ;;  %v4616_v63 = vand.u32 4294901760, %v30_v37 }
0x121a   :  { %v3906_v21 = vadd.f32 %v3905_v9, %v3831_v19  ;;  %v4691_v19 = vsub.f32 %v31_v17, %v4613_v18 }
0x121b   :  { %v3982_v22 = vpop.f32.mrf.mxu0 }
0x121c   :  { %v3983_v23 = vadd.f32 %v3982_v22, %v3906_v21  ;;  %v4692_v20 = vand.u32 4294901760, %v4691_v19  ;;  %v4698_v21 = vsub.f32 %v30_v37, %v4616_v63 }
0x121d   :  { %v5577_v24 = vpop.f32.mrf.mxu0 }
0x121e   :  { %v4056_v25 = vadd.f32 %v4055_v13, %v3983_v23  ;;  %v4693_v22 = vsub.f32 %v4691_v19, %v4692_v20  ;;  %v4699_v23 = vand.u32 4294901760, %v4698_v21 }
0x1220   :  { %v5078_v26 = vmul.f32 -1.442695, %v4056_v25  ;;  %v4694_v24 = vand.u32 4294901760, %v4693_v22 }
0x1222   :  { %5729 = vpow2.f32 %v5078_v26 }
0x1223   :  { %5731 = vtanh.f32 %v4056_v25  ;;  %v4700_v25 = vsub.f32 %v4698_v21, %v4699_v23 }
0x1225   :  { %v4701_v26 = vand.u32 4294901760, %v4700_v25 }
0x122f   :  { %v5730_v27 = vpop.eup %5729 }
0x1230   :  { %v4062_v28 = vadd.f32 1.0, %v5730_v27  ;;  %v5732_v29 = vpop.eup %5731 }
0x1232   :  { %5733 = vrcp.f32 %v4062_v28 }
0x123f   :  { %v5734_v30 = vpop.eup %5733 }
0x1240   :  { %v4066_v31 = vsel %vm5942_vm5, %v5732_v29, %v5734_v30 }
0x1241   :  { %4069 = vrot.lane.b32.xlu0 %v4066_v31, %s5800_s0  ;;  %v4067_v35 = vmul.f32 %v4066_v31, %v6190_v57 }
0x12b3   :  { %v4070_v32 = vpop.permute.xlu0 %4069 }
0x12b4   :  { %v4072_v33 = vmul.f32 %v4070_v32, %v4066_v31 }
0x12b6   :  { %4074 = vrot.lane.b32.xlu1 %v4072_v33, %s5801_s19 }
0x1328   :  { %v4075_v36 = vpop.permute.xlu1 %4074 }
0x1329   :  { %v6238_v38 = vadd.f32 %v4075_v36, %v4067_v35 }
0x132b   :  { %5735 = vtanh.f32 %v6238_v38 }
0x1338   :  { %v5736_v39 = vpop.eup %5735 }
0x1339   :  { %4080 = vrot.lane.b32.xlu0 %v5736_v39, %s5802_s20 }
0x13ab   :  { %v4081_v41 = vpop.permute.xlu0 %4080 }
0x13ac   :  { %v4083_v42 = vmul.f32 %v4081_v41, %v4066_v31 }
0x13ae   :  { %4085 = vrot.lane.b32.xlu1 %v4083_v42, %s5803_s21 }
0x1420   :  { %v4086_v43 = vpop.permute.xlu1 %4085 }
0x1421   :  { %v4089_v44 = vsel %vm650_vm6, %v4086_v43, 0  ;;  %v5080_v43 = vld [vmem:[#allocation2 + $0x30] ss:$0 sm:$0xff] }
0x1422   :  { %v4158_v46 = vand.u32 4294901760, %v4089_v44 }
0x1424   :  { %v4159_v47 = vsub.f32 %v4089_v44, %v4158_v46  ;;  %5597 = vmatmul.mubr.f32.vlgmr.msra.gmra.mxu1 %v4158_v46 }
0x1425   :  { %5607 = vmatpush3.msra.mxu1 %v5849_v40  ;;  %5610 = vmatprep.mubr.msk.f32.mxu1 %vm5799_vm2, %v5798_v14 }
0x1426   :  { %v4160_v48 = vand.u32 4294901760, %v4159_v47  ;;  %5608 = vmatprep.subr.mxu1 %v5798_v14 }
0x1427   :  { %5609 = vmatpush3.msra.mxu1 %v5851_v45 }
0x1428   :  { %v4161_v49 = vsub.f32 %v4159_v47, %v4160_v48  ;;  %5611 = vmatmul.mubr.f32.vlgmr.msra.gmra.mxu1 %v4160_v48  ;;  %5620 = vmatprep.subr.mxu1 %v5798_v14 }
0x1429   :  { %5621 = vmatpush3.msra.mxu1 %v5849_v40  ;;  %5624 = vmatprep.mubr.msk.f32.mxu1 %vm5799_vm2, %v5798_v14 }
0x142a   :  { %v4162_v50 = vand.u32 4294901760, %v4161_v49  ;;  %5622 = vmatprep.subr.mxu1 %v5798_v14 }
0x142b   :  { %5623 = vmatpush3.msra.mxu1 %v5851_v45 }
0x142c   :  { %5590 = vmatmul.mubr.f32.vlgmr.msra.gmra.mxu0 %v4162_v50  ;;  %5625 = vmatmul.mubr.f32.vlgmr.msra.gmra.mxu1 %v4158_v46 }
0x142d   :  { %5600 = vmatpush3.msra.mxu0 %v5855_v51  ;;  %5603 = vmatprep.mubr.msk.f32.mxu0 %vm5799_vm2, %v5798_v14 }
0x142e   :  { %5601 = vmatprep.subr.mxu0 %v5798_v14  ;;  %5634 = vmatprep.subr.mxu1 %v5798_v14 }
0x142f   :  { %5602 = vmatpush3.msra.mxu0 %v5858_v54  ;;  %5638 = vmatprep.mubr.msk.f32.mxu1 %vm5799_vm2, %v5798_v14 }
0x1430   :  { %5613 = vmatprep.subr.mxu0 %v5798_v14  ;;  %5604 = vmatmul.mubr.f32.vlgmr.msra.gmra.mxu0 %v4159_v47 }
0x1431   :  { %5614 = vmatpush3.msra.mxu0 %v5861_v58  ;;  %5617 = vmatprep.mubr.msk.f32.mxu0 %vm5799_vm2, %v5798_v14 }
0x1432   :  { %5615 = vmatprep.subr.mxu0 %v5798_v14  ;;  %5635 = vmatpush3.msra.mxu1 %v4694_v24 }
0x1433   :  { %5616 = vmatpush3.msra.mxu0 %v5864_v61  ;;  %5636 = vmatprep.subr.mxu1 %v5798_v14 }
0x1434   :  { %5618 = vmatmul.mubr.f32.vlgmr.msra.gmra.mxu0 %v4158_v46  ;;  %5627 = vmatprep.subr.mxu0 %v5798_v14 }
0x1435   :  { %5631 = vmatprep.mubr.msk.f32.mxu0 %vm5799_vm2, %v5798_v14  ;;  %5628 = vmatpush3.msra.mxu0 %v4613_v18 }
0x1436   :  { %5629 = vmatprep.subr.mxu0 %v5798_v14  ;;  %5637 = vmatpush3.msra.mxu1 %v4701_v26 }
0x1437   :  { %5630 = vmatpush3.msra.mxu0 %v4616_v63  ;;  %5648 = vmatprep.subr.mxu1 %v5798_v14 }
0x1438   :  { %5641 = vmatprep.subr.mxu0 %v5798_v14 }
0x14e4   :  { %v4245_v40 = vpop.f32.mrf.mxu1 }
0x14e6   :  { %v5598_v45 = vpop.f32.mrf.mxu1 }
0x14e8   :  { %v4396_v51 = vpop.f32.mrf.mxu1 }
0x14ea   :  { %v5612_v54 = vpop.f32.mrf.mxu1 }
0x14ec   :  { %v4164_v58 = vpop.f32.mrf.mxu0  ;;  %v4546_v53 = vpop.f32.mrf.mxu1 }
0x14ed   :  { %v4165_v55 = vadd.f32 %v4164_v58, %v4087_v52 }
0x14ee   :  { %v5591_v56 = vpop.f32.mrf.mxu0  ;;  %v5626_v57 = vpop.f32.mrf.mxu1 }
0x14ef   :  { %v4246_v59 = vadd.f32 %v4245_v40, %v4165_v55 }
0x14f0   :  { %v4321_v60 = vpop.f32.mrf.mxu0 }
0x14f1   :  { %v4322_v61 = vadd.f32 %v4321_v60, %v4246_v59 }
0x14f2   :  { %v5605_v62 = vpop.f32.mrf.mxu0 }
0x14f3   :  { %v4397_v1 = vadd.f32 %v4396_v51, %v4322_v61 }
0x14f4   :  { %v4473_v2 = vpop.f32.mrf.mxu0 }
0x14f5   :  { %v4474_v3 = vadd.f32 %v4473_v2, %v4397_v1 }
0x14f6   :  { %v5619_v4 = vpop.f32.mrf.mxu0 }
0x14f7   :  { %v4547_v5 = vadd.f32 %v4546_v53, %v4474_v3 }
0x14f9   :  { %v5079_v0 = vmul.f32 -1.442695, %v4547_v5 }
0x14fb   :  { %5737 = vpow2.f32 %v5079_v0 }
0x14fc   :  { %5739 = vtanh.f32 %v4547_v5 }
0x1508   :  { %v5738_v6 = vpop.eup %5737 }
0x1509   :  { %v4553_v7 = vadd.f32 1.0, %v5738_v6  ;;  %v5740_v34 = vpop.eup %5739 }
0x150b   :  { %5741 = vrcp.f32 %v4553_v7 }
0x1518   :  { %v5742_v8 = vpop.eup %5741 }
0x1519   :  { %v4557_v9 = vsel %vm5942_vm5, %v5740_v34, %v5742_v8 }
0x151a   :  { %4560 = vrot.lane.b32.xlu0 %v4557_v9, %s5800_s0  ;;  %v4558_v12 = vmul.f32 %v4557_v9, %v6238_v38 }
0x158c   :  { %v4561_v10 = vpop.permute.xlu0 %4560 }
0x158d   :  { %v4563_v11 = vmul.f32 %v4561_v10, %v4557_v9 }
0x158f   :  { %4565 = vrot.lane.b32.xlu1 %v4563_v11, %s5801_s19 }
0x1601   :  { %v4566_v13 = vpop.permute.xlu1 %4565 }
0x1602   :  { %v4568_v15 = vadd.f32 %v4566_v13, %v4558_v12 }
0x1604   :  { %5743 = vtanh.f32 %v4568_v15 }
0x1611   :  { %v5744_v16 = vpop.eup %5743 }
0x1612   :  { %4571 = vrot.lane.b32.xlu0 %v5744_v16, %s5802_s20 }
0x1684   :  { %v4572_v27 = vpop.permute.xlu0 %4571 }
0x1685   :  { %v4574_v28 = vmul.f32 %v4572_v27, %v4557_v9 }
0x1687   :  { %4580 = vrot.lane.b32.xlu1 %v4574_v28, %s5803_s21 }
0x16f9   :  { %v4581_v29 = vpop.permute.xlu1 %4580 }
0x16fa   :  { %v4582_v30 = vsel %vm650_vm6, %v4581_v29, 0 }
0x16fb   :  { %v4651_v31 = vand.u32 4294901760, %v4582_v30 }
0x16fd   :  { %v4652_v32 = vsub.f32 %v4582_v30, %v4651_v31  ;;  %5639 = vmatmul.mubr.f32.vlgmr.msra.gmra.mxu1 %v4651_v31 }
0x16fe   :  { %5649 = vmatpush3.msra.mxu1 %v4613_v18  ;;  %5652 = vmatprep.mubr.msk.f32.mxu1 %vm5799_vm2, %v5798_v14 }
0x16ff   :  { %v4653_v33 = vand.u32 4294901760, %v4652_v32  ;;  %5650 = vmatprep.subr.mxu1 %v5798_v14 }
0x1700   :  { %5651 = vmatpush3.msra.mxu1 %v4616_v63 }
0x1701   :  { %v4654_v35 = vsub.f32 %v4652_v32, %v4653_v33  ;;  %5653 = vmatmul.mubr.f32.vlgmr.msra.gmra.mxu1 %v4653_v33  ;;  %5662 = vmatprep.subr.mxu1 %v5798_v14 }
0x1702   :  { %5663 = vmatpush3.msra.mxu1 %v4613_v18  ;;  %5666 = vmatprep.mubr.msk.f32.mxu1 %vm5799_vm2, %v5798_v14 }
0x1703   :  { %v4655_v36 = vand.u32 4294901760, %v4654_v35  ;;  %5664 = vmatprep.subr.mxu1 %v5798_v14 }
0x1704   :  { %5665 = vmatpush3.msra.mxu1 %v4616_v63 }
0x1705   :  { %5632 = vmatmul.mubr.f32.vlgmr.msra.gmra.mxu0 %v4655_v36  ;;  %5667 = vmatmul.mubr.f32.vlgmr.msra.gmra.mxu1 %v4651_v31 }
0x1706   :  { %5642 = vmatpush3.msra.mxu0 %v4691_v19  ;;  %5645 = vmatprep.mubr.msk.f32.mxu0 %vm5799_vm2, %v5798_v14 }
0x1707   :  { %5643 = vmatprep.subr.mxu0 %v5798_v14 }
0x1708   :  { %5644 = vmatpush3.msra.mxu0 %v4698_v21 }
0x1709   :  { %5655 = vmatprep.subr.mxu0 %v5798_v14  ;;  %5646 = vmatmul.mubr.f32.vlgmr.msra.gmra.mxu0 %v4652_v32 }
0x170a   :  { %5656 = vmatpush3.msra.mxu0 %v4692_v20  ;;  %5659 = vmatprep.mubr.msk.f32.mxu0 %vm5799_vm2, %v5798_v14 }
0x170b   :  { %5657 = vmatprep.subr.mxu0 %v5798_v14 }
0x170c   :  { %5658 = vmatpush3.msra.mxu0 %v4699_v23 }
0x170d   :  { %5660 = vmatmul.mubr.f32.vlgmr.msra.gmra.mxu0 %v4651_v31 }
0x17bd   :  { %v4738_v38 = vpop.f32.mrf.mxu1 }
0x17bf   :  { %v5640_v39 = vpop.f32.mrf.mxu1 }
0x17c1   :  { %v4889_v41 = vpop.f32.mrf.mxu1 }
0x17c3   :  { %v5654_v42 = vpop.f32.mrf.mxu1 }
0x17c5   :  { %v4657_v44 = vpop.f32.mrf.mxu0  ;;  %v5039_v46 = vpop.f32.mrf.mxu1 }
0x17c6   :  { %v4658_v47 = vadd.f32 %v5080_v43, %v4657_v44 }
0x17c7   :  { %v5633_v48 = vpop.f32.mrf.mxu0  ;;  %v5668_v49 = vpop.f32.mrf.mxu1 }
0x17c8   :  { %v4739_v50 = vadd.f32 %v4738_v38, %v4658_v47 }
0x17c9   :  { %v4814_v40 = vpop.f32.mrf.mxu0 }
0x17ca   :  { %v4815_v45 = vadd.f32 %v4814_v40, %v4739_v50 }
0x17cb   :  { %v5647_v51 = vpop.f32.mrf.mxu0 }
0x17cc   :  { %v4890_v54 = vadd.f32 %v4889_v41, %v4815_v45 }
0x17cd   :  { %v4966_v52 = vpop.f32.mrf.mxu0 }
0x17ce   :  { %v4967_v58 = vadd.f32 %v4966_v52, %v4890_v54 }
0x17cf   :  { %v5661_v14 = vpop.f32.mrf.mxu0 }
0x17d0   :  { %v5040_v53 = vadd.f32 %v5039_v46, %v4967_v58 }
0x17d2   :  { %v5044_v55 = vsel %vm5043_vm7, %v5040_v53, -inf }
0x17d3   :  { %5045 = vmax.xlane.f32.xlu0 %v5044_v55 }
0x185c   :  { %v5046_v56 = vpop.xlane.xlu0 %5045 }
0x185d   :  { %v5047_v57 = vsub.f32 %v5040_v53, %v5046_v56 }
0x185f   :  { %v5048_v59 = vmul.f32 1.442695, %v5047_v57 }
0x1861   :  { %5745 = vpow2.f32 %v5048_v59 }
0x186e   :  { %v5746_v60 = vpop.eup %5745 }
0x186f   :  { %v5050_v61 = vsel %vm5043_vm7, %v5746_v60, 0.0 }
0x1870   :  { %5051 = vadd.xlane.f32.xlu1 %v5050_v61 }
0x18f9   :  { %v5052_v62 = vpop.xlane.xlu1 %5051 }
0x18fa   :  { %5747 = vrcp.f32 %v5052_v62 }
0x1907   :  { %v5748_v1 = vpop.eup %5747 }
0x1908   :  { %v5054_v2 = vmul.f32 %v5748_v1, %v5746_v60 }
0x190a   :  { %5055 = vst.msk [vmem:[#allocation5] sm:$0x3] %vm5043_vm7, %v5054_v2 }
0x190b   :  { %5780 = shalt.err (!%p5777_p9)
}
0x190c   :  { %5065 = dma.vmem_to_hbm [thread:$0]  %s5063_s23, 32, %s6307_s2, [#allocation4]  }
0x190d   :  { %5791 = dma.done.wait [#allocation4], 32  }
0x190e   :  { %5792 = vsyncadd [#allocation4], 4294967264 }
0x190f   :  { %5069 = vsyncpa [#allocation3], 1 }
0x1910   :  { %5070 = vsyncpa [#allocation4], 1 }

</bundles_post_ra>
